<compile_context>
chip_gen: v6e
topology: v6e:2x2x1
jax: 0.10.0
libtpu: 0.0.40
codegen_flags: <defaults>
</compile_context>

<pallas_src>
import jax
import jax.numpy as jnp
from jax.experimental import pallas as pl
from jax.experimental.pallas import tpu as pltpu

IN_FEATURES = 3072   # 3 * 32 * 32
HIDDEN = 300
OUT = 10

HIDDEN_PAD = 384     # next multiple of 128
OUT_PAD = 128        # lane-dense output width
NEG_BIG = -1e30      # "minus infinity" for padded logit lanes


def _round_up(x, m):
    return ((x + m - 1) // m) * m


def digit_kernel(x_ref, w1_ref, b1_ref, w2_ref, b2_ref, o_ref):
    # x_ref:  [TB, 3072]  bf16      w1_ref: [3072, 384] bf16   b1_ref: [1, 384] f32
    # w2_ref: [384, 128]  f32       b2_ref: [1, 128]    f32    o_ref:  [TB, 128] f32
    # fc1 (bf16 inputs, f32 accumulation) + bias + ReLU; dropout1 = identity (eval).
    h = jnp.dot(x_ref[...], w1_ref[...], preferred_element_type=jnp.float32)
    h = jnp.maximum(h + b1_ref[...], 0.0)

    # fc2 in f32 (tiny); dropout2 = identity (eval).
    # Padded logit lanes carry a -1e30 bias so they vanish under log_softmax.
    logits = jnp.dot(h, w2_ref[...], preferred_element_type=jnp.float32) + b2_ref[...]

    # log_softmax over last axis (numerically stable).
    m = jnp.max(logits, axis=-1, keepdims=True)
    z = logits - m
    lse = jnp.log(jnp.sum(jnp.exp(z), axis=-1, keepdims=True))
    o_ref[...] = z - lse


def digit_forward(x_nchw, w1, b1, w2, b2, *, max_batch_tile=512):
    """x_nchw: [B, 3, 32, 32] -> log-probs [B, 10] float32.

    Weights are stored transposed vs. nn.Linear: w1 [3072, 300], w2 [300, 10].
    """
    B = x_nchw.shape[0]
    x = x_nchw.reshape(B, IN_FEATURES)

    # Batch tile: multiple of 8 sublanes, capped at 512 rows.
    # bf16 x tile 512x3072 = 3 MiB (x2 double-buffered) + bf16 w1 2.25 MiB +
    # small w2/b/out buffers -> well under scoped VMEM on v5e/v6e/v7x.
    TB = min(max_batch_tile, _round_up(B, 8))
    B_pad = _round_up(B, TB)
    if B_pad != B:
        x = jnp.pad(x, ((0, B_pad - B), (0, 0)))
    x = x.astype(jnp.bfloat16)

    # Pad feature dims to lane-dense widths.
    w1p = jnp.pad(w1.astype(jnp.bfloat16), ((0, 0), (0, HIDDEN_PAD - HIDDEN)))
    b1p = jnp.pad(b1.astype(jnp.float32), ((0, 0), (0, HIDDEN_PAD - HIDDEN)))
    w2p = jnp.pad(w2.astype(jnp.float32),
                  ((0, HIDDEN_PAD - HIDDEN), (0, OUT_PAD - OUT)))
    # Padded logit lanes must not leak into the log-softmax sum.
    b2p = jnp.pad(b2.astype(jnp.float32), ((0, 0), (0, OUT_PAD - OUT)),
                  constant_values=NEG_BIG)

    grid = (B_pad // TB,)
    flops = 2 * B_pad * (IN_FEATURES * HIDDEN_PAD + HIDDEN_PAD * OUT_PAD)
    bytes_accessed = (x.size * 2 + w1p.size * 2 + b1p.size * 4
                      + w2p.size * 4 + b2p.size * 4 + B_pad * OUT_PAD * 4)

    out = pl.pallas_call(
        digit_kernel,
        out_shape=jax.ShapeDtypeStruct((B_pad, OUT_PAD), jnp.float32),
        grid=grid,
        in_specs=[
            pl.BlockSpec((TB, IN_FEATURES), lambda i: (i, 0)),          # x: tiled
            pl.BlockSpec((IN_FEATURES, HIDDEN_PAD), lambda i: (0, 0)),  # w1: resident
            pl.BlockSpec((1, HIDDEN_PAD), lambda i: (0, 0)),            # b1: resident
            pl.BlockSpec((HIDDEN_PAD, OUT_PAD), lambda i: (0, 0)),      # w2: resident
            pl.BlockSpec((1, OUT_PAD), lambda i: (0, 0)),               # b2: resident
        ],
        out_specs=pl.BlockSpec((TB, OUT_PAD), lambda i: (i, 0)),
        compiler_params=pltpu.CompilerParams(
            dimension_semantics=("parallel",)),
        cost_estimate=pl.CostEstimate(
            flops=flops,
            transcendentals=B_pad * OUT_PAD,
            bytes_accessed=bytes_accessed),
    )(x, w1p, b1p, w2p, b2p)

    return out[:B, :OUT]


def init_params(key):
    """Deterministic synthetic init mimicking nn.Linear (stored transposed)."""
    k1, k2, k3, k4 = jax.random.split(key, 4)
    bound1 = 1.0 / (IN_FEATURES ** 0.5)
    bound2 = 1.0 / (HIDDEN ** 0.5)
    w1 = jax.random.uniform(k1, (IN_FEATURES, HIDDEN), jnp.float32, -bound1, bound1)
    b1 = jax.random.uniform(k2, (1, HIDDEN), jnp.float32, -bound1, bound1)
    w2 = jax.random.uniform(k3, (HIDDEN, OUT), jnp.float32, -bound2, bound2)
    b2 = jax.random.uniform(k4, (1, OUT), jnp.float32, -bound2, bound2)
    return w1, b1, w2, b2


def _reference(x_nchw, w1, b1, w2, b2):
    """Pure-JAX f32 reference (eval-mode forward)."""
    x = x_nchw.reshape(x_nchw.shape[0], IN_FEATURES).astype(jnp.float32)
    h = jnp.maximum(x @ w1 + b1, 0.0)
    logits = h @ w2 + b2
    return jax.nn.log_softmax(logits, axis=-1)


if __name__ == "__main__":
    key = jax.random.PRNGKey(0)
    kx, kp = jax.random.split(key)

    # Small batch; input consistent with x.view(-1, 3072): [B, 3, 32, 32]
    B = 2
    x = jax.random.normal(kx, (B, 3, 32, 32), dtype=jnp.float32)
    w1, b1, w2, b2 = init_params(kp)

    out = digit_forward(x, w1, b1, w2, b2)
    out = jax.block_until_ready(out)

    assert out.shape == (B, OUT)
    # log_softmax rows should exponentiate-sum to 1
    assert jnp.allclose(jnp.sum(jnp.exp(out), axis=1), 1.0, atol=1e-4)
    # loose tolerance vs f32 reference (fc1 inputs are bf16 in the kernel)
    ref = _reference(x, w1, b1, w2, b2)
    assert jnp.allclose(out, ref, atol=5e-2), float(jnp.max(jnp.abs(out - ref)))
    print("KERNEL_OK")
</pallas_src>

<mosaic_0001>
module attributes {stable_mosaic.version = 11 : i64} {
  func.func @digit_kernel(%arg0: i32, %arg1: memref<8x3072xbf16, #tpu.memory_space<vmem>>, %arg2: memref<3072x384xbf16, #tpu.memory_space<vmem>>, %arg3: memref<1x384xf32, #tpu.memory_space<vmem>>, %arg4: memref<384x128xf32, #tpu.memory_space<vmem>>, %arg5: memref<1x128xf32, #tpu.memory_space<vmem>>, %arg6: memref<8x128xf32, #tpu.memory_space<vmem>>) attributes {dimension_semantics = [#tpu.dimension_semantics<parallel>], iteration_bounds = array<i64: 1>, scalar_prefetch = 0 : i64, scratch_operands = 0 : i64, tpu.core_type = #tpu.core_type<tc>, window_params = [{transform_indices = @transform_0, window_bounds = array<i64: 8, 3072>}, {pipeline_mode = #tpu.pipeline_mode<synchronous>, transform_indices = @transform_1, window_bounds = array<i64: 3072, 384>}, {pipeline_mode = #tpu.pipeline_mode<synchronous>, transform_indices = @transform_2, window_bounds = array<i64: 1, 384>}, {pipeline_mode = #tpu.pipeline_mode<synchronous>, transform_indices = @transform_3, window_bounds = array<i64: 384, 128>}, {pipeline_mode = #tpu.pipeline_mode<synchronous>, transform_indices = @transform_4, window_bounds = array<i64: 1, 128>}, {transform_indices = @transform_5, window_bounds = array<i64: 8, 128>}]} {
    %c0 = arith.constant 0 : index
    %c0_0 = arith.constant 0 : index
    %0 = vector.load %arg1[%c0, %c0_0] : memref<8x3072xbf16, #tpu.memory_space<vmem>>, vector<8x3072xbf16>
    %c0_1 = arith.constant 0 : index
    %c0_2 = arith.constant 0 : index
    %1 = vector.load %arg2[%c0_1, %c0_2] : memref<3072x384xbf16, #tpu.memory_space<vmem>>, vector<3072x384xbf16>
    %cst = arith.constant dense<0.000000e+00> : vector<8x384xf32>
    %2 = tpu.matmul %0, %1, %cst {dimension_numbers = #tpu.dot_dimension_numbers<[1], [0], [0], [1], [0, 0, 1, 1], [], []>} : vector<8x3072xbf16>, vector<3072x384xbf16>, vector<8x384xf32> -> vector<8x384xf32>
    %c0_3 = arith.constant 0 : index
    %c0_4 = arith.constant 0 : index
    %3 = vector.load %arg3[%c0_3, %c0_4] : memref<1x384xf32, #tpu.memory_space<vmem>>, vector<1x384xf32>
    %4 = vector.broadcast %3 : vector<1x384xf32> to vector<8x384xf32>
    %5 = arith.addf %2, %4 : vector<8x384xf32>
    %cst_5 = arith.constant 0.000000e+00 : f32
    %6 = vector.broadcast %cst_5 : f32 to vector<8x384xf32>
    %7 = arith.maximumf %5, %6 : vector<8x384xf32>
    %c0_6 = arith.constant 0 : index
    %c0_7 = arith.constant 0 : index
    %8 = vector.load %arg4[%c0_6, %c0_7] : memref<384x128xf32, #tpu.memory_space<vmem>>, vector<384x128xf32>
    %cst_8 = arith.constant dense<0.000000e+00> : vector<8x128xf32>
    %9 = tpu.matmul %7, %8, %cst_8 {dimension_numbers = #tpu.dot_dimension_numbers<[1], [0], [0], [1], [0, 0, 1, 1], [], []>} : vector<8x384xf32>, vector<384x128xf32>, vector<8x128xf32> -> vector<8x128xf32>
    %c0_9 = arith.constant 0 : index
    %c0_10 = arith.constant 0 : index
    %10 = vector.load %arg5[%c0_9, %c0_10] : memref<1x128xf32, #tpu.memory_space<vmem>>, vector<1x128xf32>
    %11 = vector.broadcast %10 : vector<1x128xf32> to vector<8x128xf32>
    %12 = arith.addf %9, %11 : vector<8x128xf32>
    %cst_11 = arith.constant dense<0xFF800000> : vector<8xf32>
    %13 = vector.multi_reduction <maximumf>, %12, %cst_11 [1] : vector<8x128xf32> to vector<8xf32>
    %14 = vector.shape_cast %13 : vector<8xf32> to vector<8x1xf32>
    %15 = vector.broadcast %14 : vector<8x1xf32> to vector<8x128xf32>
    %16 = arith.subf %12, %15 : vector<8x128xf32>
    %17 = math.exp %16 : vector<8x128xf32>
    %cst_12 = arith.constant dense<0.000000e+00> : vector<8xf32>
    %18 = vector.multi_reduction <add>, %17, %cst_12 [1] : vector<8x128xf32> to vector<8xf32>
    %19 = vector.shape_cast %18 : vector<8xf32> to vector<8x1xf32>
    %20 = math.log %19 : vector<8x1xf32>
    %21 = vector.broadcast %20 : vector<8x1xf32> to vector<8x128xf32>
    %22 = arith.subf %16, %21 : vector<8x128xf32>
    %c0_13 = arith.constant 0 : index
    %c0_14 = arith.constant 0 : index
    %23 = vector.load %arg6[%c0_13, %c0_14] : memref<8x128xf32, #tpu.memory_space<vmem>>, vector<8x128xf32>
    tpu.vector_store %arg6[%c0_13, %c0_14], %22 {strides = array<i32>} : memref<8x128xf32, #tpu.memory_space<vmem>>, vector<8x128xf32>,
    return
  }
  func.func @transform_0(%arg0: i32) -> (i32, i32) {
    %c0_i32 = arith.constant 0 : i32
    %c0_i32_0 = arith.constant 0 : i32
    return %arg0, %c0_i32 : i32, i32
  }
  func.func @transform_1(%arg0: i32) -> (i32, i32) {
    %c0_i32 = arith.constant 0 : i32
    %c0_i32_0 = arith.constant 0 : i32
    %c0_i32_1 = arith.constant 0 : i32
    return %c0_i32, %c0_i32_0 : i32, i32
  }
  func.func @transform_2(%arg0: i32) -> (i32, i32) {
    %c0_i32 = arith.constant 0 : i32
    %c0_i32_0 = arith.constant 0 : i32
    %c0_i32_1 = arith.constant 0 : i32
    return %c0_i32, %c0_i32_0 : i32, i32
  }
  func.func @transform_3(%arg0: i32) -> (i32, i32) {
    %c0_i32 = arith.constant 0 : i32
    %c0_i32_0 = arith.constant 0 : i32
    %c0_i32_1 = arith.constant 0 : i32
    return %c0_i32, %c0_i32_0 : i32, i32
  }
  func.func @transform_4(%arg0: i32) -> (i32, i32) {
    %c0_i32 = arith.constant 0 : i32
    %c0_i32_0 = arith.constant 0 : i32
    %c0_i32_1 = arith.constant 0 : i32
    return %c0_i32, %c0_i32_0 : i32, i32
  }
  func.func @transform_5(%arg0: i32) -> (i32, i32) {
    %c0_i32 = arith.constant 0 : i32
    %c0_i32_0 = arith.constant 0 : i32
    return %arg0, %c0_i32 : i32, i32
  }
}

</mosaic_0001>

<bundles_post_ra>
// kernel: tpu_custom_call.1
= control target key start
LH: loop header
LB: loop body
LE: loop exit
PB: predicated region body
PF: predicated region fallthrough
CT: control target
= control target key end

     0   :  { %10 = vsyncpa [#allocation3], 0  ;;  %s7381_s0 = inlined_call_operand.hbm [shape: bf16[8,3072], index: 0, kind: input, shape index: {}]   ;;  %s7382_s1 = inlined_call_operand.hbm [shape: bf16[3072,384], index: 1, kind: input, shape index: {}]   ;;  %s7383_s2 = inlined_call_operand.hbm [shape: f32[1,384], index: 2, kind: input, shape index: {}]   ;;  %s7384_s3 = inlined_call_operand.hbm [shape: f32[384,128], index: 3, kind: input, shape index: {}]   ;;  %s7385_s4 = inlined_call_operand.hbm [shape: f32[1,128], index: 4, kind: input, shape index: {}]   ;;  %s7386_s5 = inlined_call_operand.hbm [shape: f32[8,128], index: 5, kind: output, shape index: {}]  }
   0x1   :  { %11 = vsyncpa [#allocation6], 0 }
   0x2   :  { %12 = vsyncpa [#allocation9], 0 }
   0x3   :  { %13 = vsyncpa [#allocation4], 0  ;;  %s7124_s18 = smov [#allocation5]  }
   0x4   :  { %s29_s19 = sshll.u32 %s7124_s18, 4  ;;  %s30_s19 = int_to_ptr.vmem [resolvable:$true] %s29_s19 }
   0x5   :  { %s7004_s20 = scalar_lea.vmem %s30_s19, 73728  ;;  %p7009_p1 = scmp.lt.s32.totalorder %s30_s19, %s30_s19 }
   0x6   :  { %p7005_p0 = scmp.ne.s32.totalorder %s30_s19, %s7004_s20  ;;  %p7010_p2 = scmp.lt.s32.totalorder %s7004_s20, %s7004_s20 }
   0x8   :  { %p7011_p3 = por %p7010_p2, %p7009_p1 }
   0xa   :  { %p7012_p4 = pnand %p7011_p3, %p7005_p0 }
   0xc   :  { %7015 = shalt.err (!%p7012_p4)
}
   0xd   :  { %s7125_s21 = smov 192   ;;  %s7126_s22 = smov 12  }
   0xe   :  { %35 = dma.hbm_to_vmem [thread:$0]  %s7382_s1, 73728, %s30_s19, [#allocation6], %s7125_s21, %s7125_s21, %s7126_s22  }
   0xf   :  { %s7127_s25 = smov [#allocation8]  }
  0x10   :  { %s51_s26 = sshll.u32 %s7127_s25, 4  ;;  %s52_s26 = int_to_ptr.vmem [resolvable:$true] %s51_s26 }
  0x11   :  { %s7024_s27 = scalar_lea.vmem %s52_s26, 6144  ;;  %p7029_p6 = scmp.lt.s32.totalorder %s52_s26, %s52_s26 }
  0x12   :  { %p7025_p5 = scmp.ne.s32.totalorder %s52_s26, %s7024_s27  ;;  %p7030_p7 = scmp.lt.s32.totalorder %s7024_s27, %s7024_s27 }
  0x14   :  { %p7031_p8 = por %p7030_p7, %p7029_p6 }
  0x16   :  { %p7032_p9 = pnand %p7031_p8, %p7025_p5 }
  0x18   :  { %7035 = shalt.err (!%p7032_p9)
}
  0x19   :  { %s7128_s28 = smov 128   ;;  %s7129_s29 = smov 8  }
  0x1a   :  { %57 = dma.hbm_to_vmem [thread:$0]  %s7384_s3, 6144, %s52_s26, [#allocation9], %s7128_s28, %s7128_s28, %s7129_s29  }
  0x1b   :  { %s7130_s7 = smov [#allocation2]   ;;  %s7131_s9 = smov [#allocation7]  }
  0x1c   :  { %s20_s8 = sshll.u32 %s7130_s7, 4  ;;  %s42_s1 = sshll.u32 %s7131_s9, 4  ;;  %s21_s8 = int_to_ptr.vmem [resolvable:$true] %s20_s8  ;;  %s43_s1 = int_to_ptr.vmem [resolvable:$true] %s42_s1 }
  0x1d   :  { %s7044_s10 = scalar_lea.vmem %s21_s8, 1536  ;;  %p7049_p11 = scmp.lt.s32.totalorder %s21_s8, %s21_s8 }
  0x1e   :  { %p7045_p10 = scmp.ne.s32.totalorder %s21_s8, %s7044_s10  ;;  %p7050_p12 = scmp.lt.s32.totalorder %s7044_s10, %s7044_s10 }
  0x20   :  { %p7051_p13 = por %p7050_p12, %p7049_p11 }
  0x22   :  { %p7052_p0 = pnand %p7051_p13, %p7045_p10 }
  0x24   :  { %7055 = shalt.err (!%p7052_p0)
}
  0x25   :  { %23 = dma.hbm_to_vmem [thread:$0]  %s7381_s0, 1536, %s21_s8, [#allocation3]  }
  0x26   :  { %s7064_s13 = scalar_lea.vmem %s43_s1, 48  ;;  %s7068_s3 = scalar_lea.vmem %s43_s1, 64 }
  0x27   :  { %p7065_p1 = scmp.ne.s32.totalorder %s43_s1, %s7064_s13  ;;  %p7069_p2 = scmp.lt.s32.totalorder %s43_s1, %s43_s1 }
  0x28   :  { %p7070_p3 = scmp.lt.s32.totalorder %s7068_s3, %s7064_s13 }
  0x2a   :  { %p7071_p4 = por %p7070_p3, %p7069_p2 }
  0x2c   :  { %p7072_p5 = pnand %p7071_p4, %p7065_p1 }
  0x2e   :  { %7075 = shalt.err (!%p7072_p5)
}
  0x2f   :  { %45 = dma.hbm_to_vmem [thread:$0]  %s7383_s2, 48, %s43_s1, [#allocation6]  }
  0x30   :  { %s7132_s16 = smov [#allocation10]  }
  0x31   :  { %s64_s17 = sshll.u32 %s7132_s16, 4  ;;  %s65_s17 = int_to_ptr.vmem [resolvable:$true] %s64_s17 }
  0x32   :  { %s7084_s18 = scalar_lea.vmem %s65_s17, 16  ;;  %s7088_s19 = scalar_lea.vmem %s65_s17, 32 }
  0x33   :  { %p7085_p6 = scmp.ne.s32.totalorder %s65_s17, %s7084_s18  ;;  %p7089_p7 = scmp.lt.s32.totalorder %s65_s17, %s65_s17 }
  0x34   :  { %p7090_p8 = scmp.lt.s32.totalorder %s7088_s19, %s7084_s18 }
  0x36   :  { %p7091_p9 = por %p7090_p8, %p7089_p7 }
  0x38   :  { %p7092_p10 = pnand %p7091_p9, %p7085_p6 }
  0x3a   :  { %7095 = shalt.err (!%p7092_p10)
}
  0x3b   :  { %67 = dma.hbm_to_vmem [thread:$0]  %s7385_s4, 16, %s65_s17, [#allocation9]  }
  0x3c   :  { %7116 = dma.done.wait [#allocation3], 1536  }
  0x3d   :  { %7117 = vsyncadd [#allocation3], 4294965760 }
  0x3e   :  { %7118 = dma.done.wait [#allocation6], 73776  }
  0x3f   :  { %7119 = vsyncadd [#allocation6], 4294893520 }
  0x40   :  { %7120 = dma.done.wait [#allocation9], 6160  }
  0x41   :  { %7121 = vsyncadd [#allocation9], 4294961136  ;;  %v6199_v0 = vld [vmem:[#allocation5 + $0xac] ss:$12 sps:$4 sm:$0xff]   ;;  %v6203_v2 = vld [vmem:[#allocation5 + $0xa8] ss:$12 sps:$4 sm:$0xff]  }
  0x42   :  { %v6201_v1 = vld [vmem:[#allocation5 + $0x22c] ss:$12 sps:$4 sm:$0xff]   ;;  %4037 = vmatprep.subr.bf16.mxu0 %v6199_v0  ;;  %v6204_v3 = vld [vmem:[#allocation5 + $0x228] ss:$12 sps:$4 sm:$0xff]   ;;  %v6209_v6 = vld [vmem:[#allocation5 + $0x90] ss:$12 sps:$4 sm:$0xff]  }
  0x43   :  { %4078 = vmatprep.subr.bf16.mxu1 %v6201_v1  ;;  %v6205_v4 = vld [vmem:[#allocation5 + $0x94] ss:$12 sps:$4 sm:$0xff]   ;;  %4038 = vmatpush1.bf16.msra.mxu0 %v6203_v2  ;;  %v6210_v7 = vld [vmem:[#allocation5 + $0x210] ss:$12 sps:$4 sm:$0xff]   ;;  %v6215_v10 = vld [vmem:[#allocation5 + $0x78] ss:$12 sps:$4 sm:$0xff]  }
  0x44   :  { %4079 = vmatpush1.bf16.msra.mxu1 %v6204_v3  ;;  %v6207_v5 = vld [vmem:[#allocation5 + $0x214] ss:$12 sps:$4 sm:$0xff]   ;;  %4039 = vmatprep.subr.bf16.mxu0 %v6205_v4  ;;  %v6211_v8 = vld [vmem:[#allocation5 + $0x7c] ss:$12 sps:$4 sm:$0xff]   ;;  %v6216_v11 = vld [vmem:[#allocation5 + $0x1f8] ss:$12 sps:$4 sm:$0xff]  }
  0x45   :  { %4080 = vmatprep.subr.bf16.mxu1 %v6207_v5  ;;  %v6213_v9 = vld [vmem:[#allocation5 + $0x1fc] ss:$12 sps:$4 sm:$0xff]   ;;  %v6217_v12 = vld [vmem:[#allocation5 + $0x64] ss:$12 sps:$4 sm:$0xff]   ;;  %v6221_v14 = vld [vmem:[#allocation5 + $0x60] ss:$12 sps:$4 sm:$0xff]  }
  0x46   :  { %v6219_v13 = vld [vmem:[#allocation5 + $0x1e4] ss:$12 sps:$4 sm:$0xff]   ;;  %v6222_v15 = vld [vmem:[#allocation5 + $0x1e0] ss:$12 sps:$4 sm:$0xff]   ;;  %v6227_v18 = vld [vmem:[#allocation5 + $0x48] ss:$12 sps:$4 sm:$0xff]  }
  0x47   :  { %4040 = vmatpush1.bf16.msra.mxu0 %v6209_v6  ;;  %v6223_v16 = vld [vmem:[#allocation5 + $0x4c] ss:$12 sps:$4 sm:$0xff]   ;;  %v6228_v19 = vld [vmem:[#allocation5 + $0x1c8] ss:$12 sps:$4 sm:$0xff]   ;;  %v6233_v22 = vld [vmem:[#allocation5 + $0x30] ss:$12 sps:$4 sm:$0xff]  }
  0x48   :  { %4081 = vmatpush1.bf16.msra.mxu1 %v6210_v7  ;;  %4041 = vmatprep.subr.bf16.mxu0 %v6211_v8  ;;  %v6225_v17 = vld [vmem:[#allocation5 + $0x1cc] ss:$12 sps:$4 sm:$0xff]   ;;  %v6229_v20 = vld [vmem:[#allocation5 + $0x34] ss:$12 sps:$4 sm:$0xff]   ;;  %v6234_v23 = vld [vmem:[#allocation5 + $0x1b0] ss:$12 sps:$4 sm:$0xff]  }
  0x49   :  { %4082 = vmatprep.subr.bf16.mxu1 %v6213_v9  ;;  %v6231_v21 = vld [vmem:[#allocation5 + $0x1b4] ss:$12 sps:$4 sm:$0xff]   ;;  %v6235_v24 = vld [vmem:[#allocation5 + $0x1c] ss:$12 sps:$4 sm:$0xff]   ;;  %v6239_v26 = vld [vmem:[#allocation5 + $0x18] ss:$12 sps:$4 sm:$0xff]  }
  0x4a   :  { %v6237_v25 = vld [vmem:[#allocation5 + $0x19c] ss:$12 sps:$4 sm:$0xff]   ;;  %v6240_v27 = vld [vmem:[#allocation5 + $0x198] ss:$12 sps:$4 sm:$0xff]   ;;  %v6245_v30 = vld [vmem:[#allocation5] ss:$12 sps:$4 sm:$0xff]  }
  0x4b   :  { %4042 = vmatpush1.bf16.msra.mxu0 %v6215_v10  ;;  %v6241_v28 = vld [vmem:[#allocation5 + $0x4] ss:$12 sps:$4 sm:$0xff]   ;;  %v6246_v31 = vld [vmem:[#allocation5 + $0x180] ss:$12 sps:$4 sm:$0xff]   ;;  %v6251_v34 = vld [vmem:[#allocation5 + $0x168] ss:$12 sps:$4 sm:$0xff]  }
  0x4c   :  { %4083 = vmatpush1.bf16.msra.mxu1 %v6216_v11  ;;  %4043 = vmatprep.subr.bf16.mxu0 %v6217_v12  ;;  %v6243_v29 = vld [vmem:[#allocation5 + $0x184] ss:$12 sps:$4 sm:$0xff]   ;;  %v6247_v32 = vld [vmem:[#allocation5 + $0x16c] ss:$12 sps:$4 sm:$0xff]   ;;  %v6252_v35 = vld [vmem:[#allocation5 + $0x2e8] ss:$12 sps:$4 sm:$0xff]  }
  0x4d   :  { %4084 = vmatprep.subr.bf16.mxu1 %v6219_v13  ;;  %v6249_v33 = vld [vmem:[#allocation5 + $0x2ec] ss:$12 sps:$4 sm:$0xff]   ;;  %v6253_v36 = vld [vmem:[#allocation5 + $0x154] ss:$12 sps:$4 sm:$0xff]   ;;  %v6257_v38 = vld [vmem:[#allocation5 + $0x150] ss:$12 sps:$4 sm:$0xff]  }
  0x4e   :  { %v6255_v37 = vld [vmem:[#allocation5 + $0x2d4] ss:$12 sps:$4 sm:$0xff]   ;;  %v6258_v39 = vld [vmem:[#allocation5 + $0x2d0] ss:$12 sps:$4 sm:$0xff]   ;;  %v6263_v42 = vld [vmem:[#allocation5 + $0x138] ss:$12 sps:$4 sm:$0xff]  }
  0x4f   :  { %4044 = vmatpush1.bf16.msra.mxu0 %v6221_v14  ;;  %v6259_v40 = vld [vmem:[#allocation5 + $0x13c] ss:$12 sps:$4 sm:$0xff]   ;;  %v6264_v43 = vld [vmem:[#allocation5 + $0x2b8] ss:$12 sps:$4 sm:$0xff]   ;;  %v6269_v49 = vld [vmem:[#allocation5 + $0x120] ss:$12 sps:$4 sm:$0xff]  }
  0x50   :  { %4085 = vmatpush1.bf16.msra.mxu1 %v6222_v15  ;;  %4045 = vmatprep.subr.bf16.mxu0 %v6223_v16  ;;  %v6261_v41 = vld [vmem:[#allocation5 + $0x2bc] ss:$12 sps:$4 sm:$0xff]   ;;  %v6265_v44 = vld [vmem:[#allocation5 + $0x124] ss:$12 sps:$4 sm:$0xff]   ;;  %v6270_v50 = vld [vmem:[#allocation5 + $0x2a0] ss:$12 sps:$4 sm:$0xff]  }
  0x51   :  { %4086 = vmatprep.subr.bf16.mxu1 %v6225_v17  ;;  %v6267_v45 = vld [vmem:[#allocation5 + $0x2a4] ss:$12 sps:$4 sm:$0xff]   ;;  %v85_v48 = vld [vmem:[#allocation2 + $0x8] sm:$0xff]  ;;  %v6277_v56 = vld [vmem:[#allocation5 + $0xf4] ss:$12 sps:$4 sm:$0xff]   ;;  %vm7134_vm0 = vmmov 0  }
  0x52   :  { %v84_v46 = vld [vmem:[#allocation2] sm:$0xff]  ;;  %v7183_v51 = vcombine.high %v85_v48, %v85_v48  ;;  %v6271_v52 = vld [vmem:[#allocation5 + $0x10c] ss:$12 sps:$4 sm:$0xff]   ;;  %v6275_v54 = vld [vmem:[#allocation5 + $0x108] ss:$12 sps:$4 sm:$0xff]   ;;  %v7189_v7 = vcombine.low %v85_v48, %v85_v48  ;;  %s7135_s2 = smov [#allocation11]  }
  0x53   :  { %4046 = vmatpush1.bf16.msra.mxu0 %v6227_v18  ;;  %v7181_v47 = vcombine.high %v84_v46, %v84_v46  ;;  %v6273_v53 = vld [vmem:[#allocation5 + $0x28c] ss:$12 sps:$4 sm:$0xff]   ;;  %v6276_v55 = vld [vmem:[#allocation5 + $0x288] ss:$12 sps:$4 sm:$0xff]   ;;  %v6281_v58 = vld [vmem:[#allocation5 + $0xf0] ss:$12 sps:$4 sm:$0xff]   ;;  %v7187_v6 = vcombine.low %v84_v46, %v84_v46 }
  0x54   :  { %4087 = vmatpush1.bf16.msra.mxu1 %v6228_v19  ;;  %4047 = vmatprep.subr.bf16.mxu0 %v6229_v20  ;;  %v6279_v57 = vld [vmem:[#allocation5 + $0x274] ss:$12 sps:$4 sm:$0xff]   ;;  %v6282_v59 = vld [vmem:[#allocation5 + $0x270] ss:$12 sps:$4 sm:$0xff]   ;;  %v6287_v62 = vld [vmem:[#allocation5 + $0xd8] ss:$12 sps:$4 sm:$0xff]  }
  0x55   :  { %4088 = vmatprep.subr.bf16.mxu1 %v6231_v21  ;;  %4069 = vmatprep.mubr.bf16.mxu0 %v7181_v47  ;;  %v6283_v60 = vld [vmem:[#allocation5 + $0xdc] ss:$12 sps:$4 sm:$0xff]   ;;  %v6288_v63 = vld [vmem:[#allocation5 + $0x258] ss:$12 sps:$4 sm:$0xff]   ;;  %v6293_v2 = vld [vmem:[#allocation5 + $0xc0] ss:$12 sps:$4 sm:$0xff]  }
  0x56   :  { %4110 = vmatprep.mubr.bf16.mxu1 %v7183_v51  ;;  %v6285_v61 = vld [vmem:[#allocation5 + $0x25c] ss:$12 sps:$4 sm:$0xff]   ;;  %v6289_v0 = vld [vmem:[#allocation5 + $0xc4] ss:$12 sps:$4 sm:$0xff]   ;;  %v6294_v3 = vld [vmem:[#allocation5 + $0x240] ss:$12 sps:$4 sm:$0xff]  }
  0x57   :  { %4048 = vmatpush1.bf16.msra.mxu0 %v6233_v22  ;;  %v6291_v1 = vld [vmem:[#allocation5 + $0x244] ss:$12 sps:$4 sm:$0xff]   ;;  %v6301_v4 = vld [vmem:[#allocation5 + $0x3ac] ss:$12 sps:$4 sm:$0xff]   ;;  %v6299_v8 = vld [vmem:[#allocation5 + $0x3a8] ss:$12 sps:$4 sm:$0xff]  }
  0x58   :  { %4089 = vmatpush1.bf16.msra.mxu1 %v6234_v23  ;;  %4049 = vmatprep.subr.bf16.mxu0 %v6235_v24  ;;  %v6304_v5 = vld [vmem:[#allocation5 + $0x52c] ss:$12 sps:$4 sm:$0xff]   ;;  %v6302_v9 = vld [vmem:[#allocation5 + $0x528] ss:$12 sps:$4 sm:$0xff]   ;;  %v6305_v12 = vld [vmem:[#allocation5 + $0x390] ss:$12 sps:$4 sm:$0xff]  }
  0x59   :  { %4090 = vmatprep.subr.bf16.mxu1 %v6237_v25  ;;  %v6307_v10 = vld [vmem:[#allocation5 + $0x394] ss:$12 sps:$4 sm:$0xff]   ;;  %v6308_v13 = vld [vmem:[#allocation5 + $0x510] ss:$12 sps:$4 sm:$0xff]   ;;  %v6311_v16 = vld [vmem:[#allocation5 + $0x378] ss:$12 sps:$4 sm:$0xff]  }
  0x5a   :  { %v6310_v11 = vld [vmem:[#allocation5 + $0x514] ss:$12 sps:$4 sm:$0xff]   ;;  %v6313_v14 = vld [vmem:[#allocation5 + $0x37c] ss:$12 sps:$4 sm:$0xff]   ;;  %v6314_v17 = vld [vmem:[#allocation5 + $0x4f8] ss:$12 sps:$4 sm:$0xff]  }
  0x5b   :  { %4050 = vmatpush1.bf16.msra.mxu0 %v6239_v26  ;;  %v6316_v15 = vld [vmem:[#allocation5 + $0x4fc] ss:$12 sps:$4 sm:$0xff]   ;;  %v6319_v18 = vld [vmem:[#allocation5 + $0x364] ss:$12 sps:$4 sm:$0xff]   ;;  %v6317_v20 = vld [vmem:[#allocation5 + $0x360] ss:$12 sps:$4 sm:$0xff]  }
  0x5c   :  { %4091 = vmatpush1.bf16.msra.mxu1 %v6240_v27  ;;  %4051 = vmatprep.subr.bf16.mxu0 %v6241_v28  ;;  %v6322_v19 = vld [vmem:[#allocation5 + $0x4e4] ss:$12 sps:$4 sm:$0xff]   ;;  %v6320_v21 = vld [vmem:[#allocation5 + $0x4e0] ss:$12 sps:$4 sm:$0xff]   ;;  %v6323_v24 = vld [vmem:[#allocation5 + $0x348] ss:$12 sps:$4 sm:$0xff]  }
  0x5d   :  { %4092 = vmatprep.subr.bf16.mxu1 %v6243_v29  ;;  %v6325_v22 = vld [vmem:[#allocation5 + $0x34c] ss:$12 sps:$4 sm:$0xff]   ;;  %v6326_v25 = vld [vmem:[#allocation5 + $0x4c8] ss:$12 sps:$4 sm:$0xff]   ;;  %v6329_v28 = vld [vmem:[#allocation5 + $0x330] ss:$12 sps:$4 sm:$0xff]  }
  0x5e   :  { %v6328_v23 = vld [vmem:[#allocation5 + $0x4cc] ss:$12 sps:$4 sm:$0xff]   ;;  %v6331_v26 = vld [vmem:[#allocation5 + $0x334] ss:$12 sps:$4 sm:$0xff]   ;;  %v6332_v29 = vld [vmem:[#allocation5 + $0x4b0] ss:$12 sps:$4 sm:$0xff]  }
  0x5f   :  { %4052 = vmatpush1.bf16.msra.mxu0 %v6245_v30  ;;  %v6334_v27 = vld [vmem:[#allocation5 + $0x4b4] ss:$12 sps:$4 sm:$0xff]   ;;  %v6337_v30 = vld [vmem:[#allocation5 + $0x31c] ss:$12 sps:$4 sm:$0xff]   ;;  %s5224_s4 = sshll.u32 %s7135_s2, 4  ;;  %s5225_s4 = int_to_ptr.vmem [resolvable:$true] %s5224_s4 }
  0x60   :  { %4093 = vmatpush1.bf16.msra.mxu1 %v6246_v31  ;;  %4053 = vmatprep.subr.bf16.mxu0 %v6247_v32  ;;  %v6340_v31 = vld [vmem:[#allocation5 + $0x49c] ss:$12 sps:$4 sm:$0xff]   ;;  %v7193_v32 = vld [vmem:[#allocation2 + $0x10] sm:$0xff]  ;;  %s7096_s21 = scalar_lea.vmem %s5225_s4, 128  ;;  %p7101_p12 = scmp.lt.s32.totalorder %s5225_s4, %s5225_s4 }
  0x61   :  { %4094 = vmatprep.subr.bf16.mxu1 %v6249_v33  ;;  %v7195_v33 = vld [vmem:[#allocation2 + $0x18] sm:$0xff]  ;;  %v6355_v46 = vld [vmem:[#allocation5 + $0x454] ss:$12 sps:$4 sm:$0xff]   ;;  %p7097_p11 = scmp.ne.s32.totalorder %s5225_s4, %s7096_s21  ;;  %p7102_p13 = scmp.lt.s32.totalorder %s7096_s21, %s7096_s21 }
  0x62   :  { %v6358_v48 = vld [vmem:[#allocation5 + $0x5d4] ss:$12 sps:$4 sm:$0xff]  }
  0x63   :  { %4054 = vmatpush2.bf16.msra.mxu0 %v6251_v34  ;;  %v6335_v34 = vld [vmem:[#allocation5 + $0x318] ss:$12 sps:$4 sm:$0xff]   ;;  %p7103_p0 = por %p7102_p13, %p7101_p12 }
  0x64   :  { %4095 = vmatpush2.bf16.msra.mxu1 %v6252_v35  ;;  %4055 = vmatprep.subr.bf16.mxu0 %v6253_v36  ;;  %v6338_v35 = vld [vmem:[#allocation5 + $0x498] ss:$12 sps:$4 sm:$0xff]   ;;  %v7199_v36 = vcombine.high %v7193_v32, %v7193_v32 }
  0x65   :  { %4096 = vmatprep.subr.bf16.mxu1 %v6255_v37  ;;  %v7203_v37 = vcombine.high %v7195_v33, %v7195_v33  ;;  %p7104_p1 = pnand %p7103_p0, %p7097_p11 }
  0x67   :  { %4056 = vmatpush2.bf16.msra.mxu0 %v6257_v38  ;;  %v6343_v38 = vld [vmem:[#allocation5 + $0x304] ss:$12 sps:$4 sm:$0xff]  }
  0x68   :  { %4097 = vmatpush2.bf16.msra.mxu1 %v6258_v39  ;;  %4057 = vmatprep.subr.bf16.mxu0 %v6259_v40  ;;  %v6346_v39 = vld [vmem:[#allocation5 + $0x484] ss:$12 sps:$4 sm:$0xff]   ;;  %v6341_v40 = vld [vmem:[#allocation5 + $0x300] ss:$12 sps:$4 sm:$0xff]  }
  0x69   :  { %4098 = vmatprep.subr.bf16.mxu1 %v6261_v41  ;;  %v6344_v41 = vld [vmem:[#allocation5 + $0x480] ss:$12 sps:$4 sm:$0xff]  }
  0x6b   :  { %4058 = vmatpush2.bf16.msra.mxu0 %v6263_v42  ;;  %v6349_v42 = vld [vmem:[#allocation5 + $0x46c] ss:$12 sps:$4 sm:$0xff]  }
  0x6c   :  { %4099 = vmatpush2.bf16.msra.mxu1 %v6264_v43  ;;  %4059 = vmatprep.subr.bf16.mxu0 %v6265_v44  ;;  %v6352_v43 = vld [vmem:[#allocation5 + $0x5ec] ss:$12 sps:$4 sm:$0xff]   ;;  %v6347_v44 = vld [vmem:[#allocation5 + $0x468] ss:$12 sps:$4 sm:$0xff]  }
  0x6d   :  { %4100 = vmatprep.subr.bf16.mxu1 %v6267_v45  ;;  %v6350_v45 = vld [vmem:[#allocation5 + $0x5e8] ss:$12 sps:$4 sm:$0xff]  }
  0x6f   :  { %4060 = vmatpush2.bf16.msra.mxu0 %v6269_v49  ;;  %v6353_v49 = vld [vmem:[#allocation5 + $0x450] ss:$12 sps:$4 sm:$0xff]  }
  0x70   :  { %4101 = vmatpush2.bf16.msra.mxu1 %v6270_v50  ;;  %4061 = vmatprep.subr.bf16.mxu0 %v6271_v52  ;;  %v6356_v50 = vld [vmem:[#allocation5 + $0x5d0] ss:$12 sps:$4 sm:$0xff]  }
  0x71   :  { %4102 = vmatprep.subr.bf16.mxu1 %v6273_v53  ;;  %v6361_v52 = vld [vmem:[#allocation5 + $0x43c] ss:$12 sps:$4 sm:$0xff]  }
  0x72   :  { %v6364_v53 = vld [vmem:[#allocation5 + $0x5bc] ss:$12 sps:$4 sm:$0xff]  }
  0x73   :  { %4062 = vmatpush2.bf16.msra.mxu0 %v6275_v54  ;;  %v6359_v54 = vld [vmem:[#allocation5 + $0x438] ss:$12 sps:$4 sm:$0xff]  }
  0x74   :  { %4103 = vmatpush2.bf16.msra.mxu1 %v6276_v55  ;;  %4063 = vmatprep.subr.bf16.mxu0 %v6277_v56  ;;  %v6362_v55 = vld [vmem:[#allocation5 + $0x5b8] ss:$12 sps:$4 sm:$0xff]  }
  0x75   :  { %4104 = vmatprep.subr.bf16.mxu1 %v6279_v57  ;;  %v6367_v56 = vld [vmem:[#allocation5 + $0x424] ss:$12 sps:$4 sm:$0xff]  }
  0x76   :  { %v6370_v57 = vld [vmem:[#allocation5 + $0x5a4] ss:$12 sps:$4 sm:$0xff]  }
  0x77   :  { %4064 = vmatpush2.bf16.msra.mxu0 %v6281_v58  ;;  %v6365_v58 = vld [vmem:[#allocation5 + $0x420] ss:$12 sps:$4 sm:$0xff]  }
  0x78   :  { %4105 = vmatpush2.bf16.msra.mxu1 %v6282_v59  ;;  %4065 = vmatprep.subr.bf16.mxu0 %v6283_v60  ;;  %v6368_v59 = vld [vmem:[#allocation5 + $0x5a0] ss:$12 sps:$4 sm:$0xff]  }
  0x79   :  { %4106 = vmatprep.subr.bf16.mxu1 %v6285_v61  ;;  %v6373_v60 = vld [vmem:[#allocation5 + $0x40c] ss:$12 sps:$4 sm:$0xff]  }
  0x7a   :  { %v6376_v61 = vld [vmem:[#allocation5 + $0x58c] ss:$12 sps:$4 sm:$0xff]  }
  0x7b   :  { %4066 = vmatpush2.bf16.msra.mxu0 %v6287_v62  ;;  %v6371_v62 = vld [vmem:[#allocation5 + $0x408] ss:$12 sps:$4 sm:$0xff]  }
  0x7c   :  { %4107 = vmatpush2.bf16.msra.mxu1 %v6288_v63  ;;  %4067 = vmatprep.subr.bf16.mxu0 %v6289_v0  ;;  %v6374_v63 = vld [vmem:[#allocation5 + $0x588] ss:$12 sps:$4 sm:$0xff]  }
  0x7d   :  { %4108 = vmatprep.subr.bf16.mxu1 %v6291_v1  ;;  %v6379_v0 = vld [vmem:[#allocation5 + $0x3f4] ss:$12 sps:$4 sm:$0xff]  }
  0x7e   :  { %v6382_v1 = vld [vmem:[#allocation5 + $0x574] ss:$12 sps:$4 sm:$0xff]  }
  0x7f   :  { %4068 = vmatpush2.bf16.msra.mxu0 %v6293_v2  ;;  %v6377_v2 = vld [vmem:[#allocation5 + $0x3f0] ss:$12 sps:$4 sm:$0xff]  }
  0x80   :  { %4109 = vmatpush2.bf16.msra.mxu1 %v6294_v3  ;;  %4119 = vmatprep.subr.bf16.mxu0 %v6301_v4  ;;  %v6380_v3 = vld [vmem:[#allocation5 + $0x570] ss:$12 sps:$4 sm:$0xff]  }
  0x81   :  { %4160 = vmatprep.subr.bf16.mxu1 %v6304_v5  ;;  %v6385_v4 = vld [vmem:[#allocation5 + $0x3dc] ss:$12 sps:$4 sm:$0xff]  }
  0x82   :  { %4070 = vmatmul.mubr.bf16.vlgmr.msra.gmra.mxu0 %v7187_v6  ;;  %v6388_v5 = vld [vmem:[#allocation5 + $0x55c] ss:$12 sps:$4 sm:$0xff]  }
  0x83   :  { %4111 = vmatmul.mubr.bf16.vlgmr.msra.gmra.mxu1 %v7189_v7  ;;  %4120 = vmatpush1.bf16.msra.mxu0 %v6299_v8  ;;  %v6383_v8 = vld [vmem:[#allocation5 + $0x3d8] ss:$12 sps:$4 sm:$0xff]  }
  0x84   :  { %4161 = vmatpush1.bf16.msra.mxu1 %v6302_v9  ;;  %4121 = vmatprep.subr.bf16.mxu0 %v6307_v10  ;;  %v6386_v9 = vld [vmem:[#allocation5 + $0x558] ss:$12 sps:$4 sm:$0xff]  }
  0x85   :  { %4162 = vmatprep.subr.bf16.mxu1 %v6310_v11  ;;  %4151 = vmatprep.mubr.bf16.mxu0 %v7199_v36  ;;  %v6391_v10 = vld [vmem:[#allocation5 + $0x3c4] ss:$12 sps:$4 sm:$0xff]  }
  0x86   :  { %4192 = vmatprep.mubr.bf16.mxu1 %v7203_v37  ;;  %v6394_v11 = vld [vmem:[#allocation5 + $0x544] ss:$12 sps:$4 sm:$0xff]  }
  0x87   :  { %4122 = vmatpush1.bf16.msra.mxu0 %v6305_v12  ;;  %v6389_v12 = vld [vmem:[#allocation5 + $0x3c0] ss:$12 sps:$4 sm:$0xff]  }
  0x88   :  { %4163 = vmatpush1.bf16.msra.mxu1 %v6308_v13  ;;  %4123 = vmatprep.subr.bf16.mxu0 %v6313_v14  ;;  %v6392_v13 = vld [vmem:[#allocation5 + $0x540] ss:$12 sps:$4 sm:$0xff]  }
  0x89   :  { %4164 = vmatprep.subr.bf16.mxu1 %v6316_v15  ;;  %v6401_v14 = vld [vmem:[#allocation5 + $0x6ac] ss:$12 sps:$4 sm:$0xff]  }
  0x8a   :  { %v6404_v15 = vld [vmem:[#allocation5 + $0x82c] ss:$12 sps:$4 sm:$0xff]  }
  0x8b   :  { %4124 = vmatpush1.bf16.msra.mxu0 %v6311_v16  ;;  %v7209_v16 = vcombine.low %v7193_v32, %v7193_v32  ;;  %v6419_v32 = vld [vmem:[#allocation5 + $0x664] ss:$12 sps:$4 sm:$0xff]  }
  0x8c   :  { %4165 = vmatpush1.bf16.msra.mxu1 %v6314_v17  ;;  %4125 = vmatprep.subr.bf16.mxu0 %v6319_v18  ;;  %v7213_v17 = vcombine.low %v7195_v33, %v7195_v33  ;;  %v6399_v18 = vld [vmem:[#allocation5 + $0x6a8] ss:$12 sps:$4 sm:$0xff]   ;;  %v6422_v33 = vld [vmem:[#allocation5 + $0x7e4] ss:$12 sps:$4 sm:$0xff]  }
  0x8d   :  { %4166 = vmatprep.subr.bf16.mxu1 %v6322_v19  ;;  %v6402_v19 = vld [vmem:[#allocation5 + $0x828] ss:$12 sps:$4 sm:$0xff]  }
  0x8f   :  { %4126 = vmatpush1.bf16.msra.mxu0 %v6317_v20  ;;  %v6407_v20 = vld [vmem:[#allocation5 + $0x694] ss:$12 sps:$4 sm:$0xff]  }
  0x90   :  { %4167 = vmatpush1.bf16.msra.mxu1 %v6320_v21  ;;  %4127 = vmatprep.subr.bf16.mxu0 %v6325_v22  ;;  %v6410_v21 = vld [vmem:[#allocation5 + $0x814] ss:$12 sps:$4 sm:$0xff]  }
  0x91   :  { %4168 = vmatprep.subr.bf16.mxu1 %v6328_v23  ;;  %v7215_v22 = vld [vmem:[#allocation2 + $0x20] sm:$0xff]  ;;  %v7217_v23 = vld [vmem:[#allocation2 + $0x28] sm:$0xff] }
  0x93   :  { %4128 = vmatpush1.bf16.msra.mxu0 %v6323_v24  ;;  %v7221_v24 = vcombine.high %v7215_v22, %v7215_v22 }
  0x94   :  { %4169 = vmatpush1.bf16.msra.mxu1 %v6326_v25  ;;  %4129 = vmatprep.subr.bf16.mxu0 %v6331_v26  ;;  %v7225_v25 = vcombine.high %v7217_v23, %v7217_v23  ;;  %v6405_v26 = vld [vmem:[#allocation5 + $0x690] ss:$12 sps:$4 sm:$0xff]  }
  0x95   :  { %4170 = vmatprep.subr.bf16.mxu1 %v6334_v27  ;;  %v6408_v27 = vld [vmem:[#allocation5 + $0x810] ss:$12 sps:$4 sm:$0xff]  }
  0x97   :  { %4130 = vmatpush1.bf16.msra.mxu0 %v6329_v28  ;;  %v6413_v28 = vld [vmem:[#allocation5 + $0x67c] ss:$12 sps:$4 sm:$0xff]  }
  0x98   :  { %4171 = vmatpush1.bf16.msra.mxu1 %v6332_v29  ;;  %4131 = vmatprep.subr.bf16.mxu0 %v6337_v30  ;;  %v6416_v29 = vld [vmem:[#allocation5 + $0x7fc] ss:$12 sps:$4 sm:$0xff]   ;;  %v6411_v30 = vld [vmem:[#allocation5 + $0x678] ss:$12 sps:$4 sm:$0xff]  }
  0x99   :  { %4172 = vmatprep.subr.bf16.mxu1 %v6340_v31  ;;  %v6414_v31 = vld [vmem:[#allocation5 + $0x7f8] ss:$12 sps:$4 sm:$0xff]  }
  0x9b   :  { %4132 = vmatpush1.bf16.msra.mxu0 %v6335_v34  ;;  %v6417_v34 = vld [vmem:[#allocation5 + $0x660] ss:$12 sps:$4 sm:$0xff]  }
  0x9c   :  { %4173 = vmatpush1.bf16.msra.mxu1 %v6338_v35  ;;  %4133 = vmatprep.subr.bf16.mxu0 %v6343_v38  ;;  %v6420_v35 = vld [vmem:[#allocation5 + $0x7e0] ss:$12 sps:$4 sm:$0xff]  }
  0x9d   :  { %4174 = vmatprep.subr.bf16.mxu1 %v6346_v39  ;;  %v6425_v38 = vld [vmem:[#allocation5 + $0x64c] ss:$12 sps:$4 sm:$0xff]  }
  0x9e   :  { %v6428_v39 = vld [vmem:[#allocation5 + $0x7cc] ss:$12 sps:$4 sm:$0xff]  }
  0x9f   :  { %4134 = vmatpush1.bf16.msra.mxu0 %v6341_v40  ;;  %v6423_v40 = vld [vmem:[#allocation5 + $0x648] ss:$12 sps:$4 sm:$0xff]  }
  0xa0   :  { %4175 = vmatpush1.bf16.msra.mxu1 %v6344_v41  ;;  %4135 = vmatprep.subr.bf16.mxu0 %v6349_v42  ;;  %v6426_v41 = vld [vmem:[#allocation5 + $0x7c8] ss:$12 sps:$4 sm:$0xff]  }
  0xa1   :  { %4176 = vmatprep.subr.bf16.mxu1 %v6352_v43  ;;  %v6431_v42 = vld [vmem:[#allocation5 + $0x634] ss:$12 sps:$4 sm:$0xff]  }
  0xa2   :  { %v6434_v43 = vld [vmem:[#allocation5 + $0x7b4] ss:$12 sps:$4 sm:$0xff]  }
  0xa3   :  { %4136 = vmatpush2.bf16.msra.mxu0 %v6347_v44  ;;  %v6429_v44 = vld [vmem:[#allocation5 + $0x630] ss:$12 sps:$4 sm:$0xff]  }
  0xa4   :  { %4177 = vmatpush2.bf16.msra.mxu1 %v6350_v45  ;;  %4137 = vmatprep.subr.bf16.mxu0 %v6355_v46  ;;  %v6432_v45 = vld [vmem:[#allocation5 + $0x7b0] ss:$12 sps:$4 sm:$0xff]  }
  0xa5   :  { %4178 = vmatprep.subr.bf16.mxu1 %v6358_v48  ;;  %v6437_v46 = vld [vmem:[#allocation5 + $0x61c] ss:$12 sps:$4 sm:$0xff]  }
  0xa6   :  { %v6440_v48 = vld [vmem:[#allocation5 + $0x79c] ss:$12 sps:$4 sm:$0xff]  }
  0xa7   :  { %4138 = vmatpush2.bf16.msra.mxu0 %v6353_v49  ;;  %v6435_v49 = vld [vmem:[#allocation5 + $0x618] ss:$12 sps:$4 sm:$0xff]  }
  0xa8   :  { %4179 = vmatpush2.bf16.msra.mxu1 %v6356_v50  ;;  %4139 = vmatprep.subr.bf16.mxu0 %v6361_v52  ;;  %v6438_v50 = vld [vmem:[#allocation5 + $0x798] ss:$12 sps:$4 sm:$0xff]  }
  0xa9   :  { %4180 = vmatprep.subr.bf16.mxu1 %v6364_v53  ;;  %v6443_v52 = vld [vmem:[#allocation5 + $0x604] ss:$12 sps:$4 sm:$0xff]  }
  0xaa   :  { %v6446_v53 = vld [vmem:[#allocation5 + $0x784] ss:$12 sps:$4 sm:$0xff]  }
  0xab   :  { %4140 = vmatpush2.bf16.msra.mxu0 %v6359_v54  ;;  %v6441_v54 = vld [vmem:[#allocation5 + $0x600] ss:$12 sps:$4 sm:$0xff]  }
  0xac   :  { %4181 = vmatpush2.bf16.msra.mxu1 %v6362_v55  ;;  %4141 = vmatprep.subr.bf16.mxu0 %v6367_v56  ;;  %v6444_v55 = vld [vmem:[#allocation5 + $0x780] ss:$12 sps:$4 sm:$0xff]  }
  0xad   :  { %4182 = vmatprep.subr.bf16.mxu1 %v6370_v57  ;;  %v6449_v56 = vld [vmem:[#allocation5 + $0x76c] ss:$12 sps:$4 sm:$0xff]  }
  0xae   :  { %v6452_v57 = vld [vmem:[#allocation5 + $0x8ec] ss:$12 sps:$4 sm:$0xff]  }
  0xaf   :  { %4142 = vmatpush2.bf16.msra.mxu0 %v6365_v58  ;;  %v6447_v58 = vld [vmem:[#allocation5 + $0x768] ss:$12 sps:$4 sm:$0xff]  }
  0xb0   :  { %4183 = vmatpush2.bf16.msra.mxu1 %v6368_v59  ;;  %4143 = vmatprep.subr.bf16.mxu0 %v6373_v60  ;;  %v6450_v59 = vld [vmem:[#allocation5 + $0x8e8] ss:$12 sps:$4 sm:$0xff]  }
  0xb1   :  { %4184 = vmatprep.subr.bf16.mxu1 %v6376_v61  ;;  %v6455_v60 = vld [vmem:[#allocation5 + $0x754] ss:$12 sps:$4 sm:$0xff]  }
  0xb2   :  { %v6458_v61 = vld [vmem:[#allocation5 + $0x8d4] ss:$12 sps:$4 sm:$0xff]  }
  0xb3   :  { %4144 = vmatpush2.bf16.msra.mxu0 %v6371_v62  ;;  %v6453_v62 = vld [vmem:[#allocation5 + $0x750] ss:$12 sps:$4 sm:$0xff]  }
  0xb4   :  { %4185 = vmatpush2.bf16.msra.mxu1 %v6374_v63  ;;  %4145 = vmatprep.subr.bf16.mxu0 %v6379_v0  ;;  %v6456_v63 = vld [vmem:[#allocation5 + $0x8d0] ss:$12 sps:$4 sm:$0xff]  }
  0xb5   :  { %4186 = vmatprep.subr.bf16.mxu1 %v6382_v1  ;;  %v6461_v0 = vld [vmem:[#allocation5 + $0x73c] ss:$12 sps:$4 sm:$0xff]  }
  0xb6   :  { %v6464_v1 = vld [vmem:[#allocation5 + $0x8bc] ss:$12 sps:$4 sm:$0xff]  }
  0xb7   :  { %4146 = vmatpush2.bf16.msra.mxu0 %v6377_v2  ;;  %v6459_v2 = vld [vmem:[#allocation5 + $0x738] ss:$12 sps:$4 sm:$0xff]  }
  0xb8   :  { %4187 = vmatpush2.bf16.msra.mxu1 %v6380_v3  ;;  %4147 = vmatprep.subr.bf16.mxu0 %v6385_v4  ;;  %v6462_v3 = vld [vmem:[#allocation5 + $0x8b8] ss:$12 sps:$4 sm:$0xff]  }
  0xb9   :  { %4188 = vmatprep.subr.bf16.mxu1 %v6388_v5  ;;  %v6467_v4 = vld [vmem:[#allocation5 + $0x724] ss:$12 sps:$4 sm:$0xff]  }
  0xba   :  { %v6470_v5 = vld [vmem:[#allocation5 + $0x8a4] ss:$12 sps:$4 sm:$0xff]  }
  0xbb   :  { %4148 = vmatpush2.bf16.msra.mxu0 %v6383_v8  ;;  %v6465_v8 = vld [vmem:[#allocation5 + $0x720] ss:$12 sps:$4 sm:$0xff]  }
  0xbc   :  { %4189 = vmatpush2.bf16.msra.mxu1 %v6386_v9  ;;  %4149 = vmatprep.subr.bf16.mxu0 %v6391_v10  ;;  %v6468_v9 = vld [vmem:[#allocation5 + $0x8a0] ss:$12 sps:$4 sm:$0xff]  }
  0xbd   :  { %4190 = vmatprep.subr.bf16.mxu1 %v6394_v11  ;;  %v6473_v10 = vld [vmem:[#allocation5 + $0x70c] ss:$12 sps:$4 sm:$0xff]  }
  0xbe   :  { %v6476_v11 = vld [vmem:[#allocation5 + $0x88c] ss:$12 sps:$4 sm:$0xff]  }
  0xbf   :  { %4150 = vmatpush2.bf16.msra.mxu0 %v6389_v12  ;;  %v6471_v12 = vld [vmem:[#allocation5 + $0x708] ss:$12 sps:$4 sm:$0xff]  }
  0xc0   :  { %4191 = vmatpush2.bf16.msra.mxu1 %v6392_v13  ;;  %4201 = vmatprep.subr.bf16.mxu0 %v6401_v14  ;;  %v6474_v13 = vld [vmem:[#allocation5 + $0x888] ss:$12 sps:$4 sm:$0xff]  }
  0xc1   :  { %4242 = vmatprep.subr.bf16.mxu1 %v6404_v15  ;;  %v6479_v14 = vld [vmem:[#allocation5 + $0x6f4] ss:$12 sps:$4 sm:$0xff]  }
  0xc2   :  { %4152 = vmatmul.mubr.bf16.vlgmr.msra.gmra.mxu0 %v7209_v16  ;;  %v6482_v15 = vld [vmem:[#allocation5 + $0x874] ss:$12 sps:$4 sm:$0xff]  }
  0xc3   :  { %4193 = vmatmul.mubr.bf16.vlgmr.msra.gmra.mxu1 %v7213_v17  ;;  %4202 = vmatpush1.bf16.msra.mxu0 %v6399_v18  ;;  %v6477_v18 = vld [vmem:[#allocation5 + $0x6f0] ss:$12 sps:$4 sm:$0xff]  }
  0xc4   :  { %4243 = vmatpush1.bf16.msra.mxu1 %v6402_v19  ;;  %4203 = vmatprep.subr.bf16.mxu0 %v6407_v20  ;;  %v6480_v19 = vld [vmem:[#allocation5 + $0x870] ss:$12 sps:$4 sm:$0xff]  }
  0xc5   :  { %4244 = vmatprep.subr.bf16.mxu1 %v6410_v21  ;;  %4233 = vmatprep.mubr.bf16.mxu0 %v7221_v24  ;;  %v6485_v20 = vld [vmem:[#allocation5 + $0x6dc] ss:$12 sps:$4 sm:$0xff]  }
  0xc6   :  { %4274 = vmatprep.mubr.bf16.mxu1 %v7225_v25  ;;  %v6488_v21 = vld [vmem:[#allocation5 + $0x85c] ss:$12 sps:$4 sm:$0xff]  }
  0xc7   :  { %4204 = vmatpush1.bf16.msra.mxu0 %v6405_v26  ;;  %v6483_v26 = vld [vmem:[#allocation5 + $0x6d8] ss:$12 sps:$4 sm:$0xff]  }
  0xc8   :  { %4245 = vmatpush1.bf16.msra.mxu1 %v6408_v27  ;;  %4205 = vmatprep.subr.bf16.mxu0 %v6413_v28  ;;  %v6486_v27 = vld [vmem:[#allocation5 + $0x858] ss:$12 sps:$4 sm:$0xff]  }
  0xc9   :  { %4246 = vmatprep.subr.bf16.mxu1 %v6416_v29  ;;  %v6491_v28 = vld [vmem:[#allocation5 + $0x6c4] ss:$12 sps:$4 sm:$0xff]  }
  0xca   :  { %v6494_v29 = vld [vmem:[#allocation5 + $0x844] ss:$12 sps:$4 sm:$0xff]  }
  0xcb   :  { %4206 = vmatpush1.bf16.msra.mxu0 %v6411_v30  ;;  %v6489_v30 = vld [vmem:[#allocation5 + $0x6c0] ss:$12 sps:$4 sm:$0xff]  }
  0xcc   :  { %4247 = vmatpush1.bf16.msra.mxu1 %v6414_v31  ;;  %4207 = vmatprep.subr.bf16.mxu0 %v6419_v32  ;;  %v6492_v31 = vld [vmem:[#allocation5 + $0x840] ss:$12 sps:$4 sm:$0xff]  }
  0xcd   :  { %4248 = vmatprep.subr.bf16.mxu1 %v6422_v33  ;;  %v6501_v32 = vld [vmem:[#allocation5 + $0x9ac] ss:$12 sps:$4 sm:$0xff]  }
  0xce   :  { %v6504_v33 = vld [vmem:[#allocation5 + $0xb2c] ss:$12 sps:$4 sm:$0xff]  }
  0xcf   :  { %4208 = vmatpush1.bf16.msra.mxu0 %v6417_v34  ;;  %v6499_v34 = vld [vmem:[#allocation5 + $0x9a8] ss:$12 sps:$4 sm:$0xff]  }
  0xd0   :  { %4249 = vmatpush1.bf16.msra.mxu1 %v6420_v35  ;;  %4209 = vmatprep.subr.bf16.mxu0 %v6425_v38  ;;  %v7231_v35 = vld [vmem:[#allocation2 + $0x30] sm:$0xff]  ;;  %v7235_v38 = vcombine.low %v7215_v22, %v7215_v22 }
  0xd1   :  { %4250 = vmatprep.subr.bf16.mxu1 %v6428_v39  ;;  %v7239_v39 = vcombine.low %v7217_v23, %v7217_v23  ;;  %v6505_v23 = vld [vmem:[#allocation5 + $0x990] ss:$12 sps:$4 sm:$0xff]  }
  0xd3   :  { %4210 = vmatpush1.bf16.msra.mxu0 %v6423_v40  ;;  %v7241_v40 = vld [vmem:[#allocation2 + $0x38] sm:$0xff] }
  0xd4   :  { %4251 = vmatpush1.bf16.msra.mxu1 %v6426_v41  ;;  %4211 = vmatprep.subr.bf16.mxu0 %v6431_v42  ;;  %v6502_v41 = vld [vmem:[#allocation5 + $0xb28] ss:$12 sps:$4 sm:$0xff]   ;;  %v7249_v22 = vcombine.high %v7241_v40, %v7241_v40 }
  0xd5   :  { %4252 = vmatprep.subr.bf16.mxu1 %v6434_v43  ;;  %v6507_v42 = vld [vmem:[#allocation5 + $0x994] ss:$12 sps:$4 sm:$0xff]  }
  0xd6   :  { %v6510_v43 = vld [vmem:[#allocation5 + $0xb14] ss:$12 sps:$4 sm:$0xff]  }
  0xd7   :  { %4212 = vmatpush1.bf16.msra.mxu0 %v6429_v44  ;;  %v7245_v44 = vcombine.high %v7231_v35, %v7231_v35 }
  0xd8   :  { %4253 = vmatpush1.bf16.msra.mxu1 %v6432_v45  ;;  %4213 = vmatprep.subr.bf16.mxu0 %v6437_v46  ;;  %v6508_v45 = vld [vmem:[#allocation5 + $0xb10] ss:$12 sps:$4 sm:$0xff]  }
  0xd9   :  { %4254 = vmatprep.subr.bf16.mxu1 %v6440_v48  ;;  %v6513_v46 = vld [vmem:[#allocation5 + $0x97c] ss:$12 sps:$4 sm:$0xff]  }
  0xda   :  { %v6516_v48 = vld [vmem:[#allocation5 + $0xafc] ss:$12 sps:$4 sm:$0xff]  }
  0xdb   :  { %4214 = vmatpush1.bf16.msra.mxu0 %v6435_v49  ;;  %v6511_v49 = vld [vmem:[#allocation5 + $0x978] ss:$12 sps:$4 sm:$0xff]  }
  0xdc   :  { %4255 = vmatpush1.bf16.msra.mxu1 %v6438_v50  ;;  %4215 = vmatprep.subr.bf16.mxu0 %v6443_v52  ;;  %v6514_v50 = vld [vmem:[#allocation5 + $0xaf8] ss:$12 sps:$4 sm:$0xff]  }
  0xdd   :  { %4256 = vmatprep.subr.bf16.mxu1 %v6446_v53  ;;  %v6519_v52 = vld [vmem:[#allocation5 + $0x964] ss:$12 sps:$4 sm:$0xff]  }
  0xde   :  { %v6522_v53 = vld [vmem:[#allocation5 + $0xae4] ss:$12 sps:$4 sm:$0xff]  }
  0xdf   :  { %4216 = vmatpush1.bf16.msra.mxu0 %v6441_v54  ;;  %v6517_v54 = vld [vmem:[#allocation5 + $0x960] ss:$12 sps:$4 sm:$0xff]  }
  0xe0   :  { %4257 = vmatpush1.bf16.msra.mxu1 %v6444_v55  ;;  %4217 = vmatprep.subr.bf16.mxu0 %v6449_v56  ;;  %v6520_v55 = vld [vmem:[#allocation5 + $0xae0] ss:$12 sps:$4 sm:$0xff]  }
  0xe1   :  { %4258 = vmatprep.subr.bf16.mxu1 %v6452_v57  ;;  %v6525_v56 = vld [vmem:[#allocation5 + $0x94c] ss:$12 sps:$4 sm:$0xff]  }
  0xe2   :  { %v6528_v57 = vld [vmem:[#allocation5 + $0xacc] ss:$12 sps:$4 sm:$0xff]  }
  0xe3   :  { %4218 = vmatpush2.bf16.msra.mxu0 %v6447_v58  ;;  %v6523_v58 = vld [vmem:[#allocation5 + $0x948] ss:$12 sps:$4 sm:$0xff]  }
  0xe4   :  { %4259 = vmatpush2.bf16.msra.mxu1 %v6450_v59  ;;  %4219 = vmatprep.subr.bf16.mxu0 %v6455_v60  ;;  %v6526_v59 = vld [vmem:[#allocation5 + $0xac8] ss:$12 sps:$4 sm:$0xff]  }
  0xe5   :  { %4260 = vmatprep.subr.bf16.mxu1 %v6458_v61  ;;  %v6531_v60 = vld [vmem:[#allocation5 + $0x934] ss:$12 sps:$4 sm:$0xff]  }
  0xe6   :  { %v6534_v61 = vld [vmem:[#allocation5 + $0xab4] ss:$12 sps:$4 sm:$0xff]  }
  0xe7   :  { %4220 = vmatpush2.bf16.msra.mxu0 %v6453_v62  ;;  %v6529_v62 = vld [vmem:[#allocation5 + $0x930] ss:$12 sps:$4 sm:$0xff]  }
  0xe8   :  { %4261 = vmatpush2.bf16.msra.mxu1 %v6456_v63  ;;  %4221 = vmatprep.subr.bf16.mxu0 %v6461_v0  ;;  %v6532_v63 = vld [vmem:[#allocation5 + $0xab0] ss:$12 sps:$4 sm:$0xff]  }
  0xe9   :  { %4262 = vmatprep.subr.bf16.mxu1 %v6464_v1  ;;  %v6537_v0 = vld [vmem:[#allocation5 + $0x91c] ss:$12 sps:$4 sm:$0xff]  }
  0xea   :  { %v6540_v1 = vld [vmem:[#allocation5 + $0xa9c] ss:$12 sps:$4 sm:$0xff]  }
  0xeb   :  { %4222 = vmatpush2.bf16.msra.mxu0 %v6459_v2  ;;  %v6535_v2 = vld [vmem:[#allocation5 + $0x918] ss:$12 sps:$4 sm:$0xff]  }
  0xec   :  { %4263 = vmatpush2.bf16.msra.mxu1 %v6462_v3  ;;  %4223 = vmatprep.subr.bf16.mxu0 %v6467_v4  ;;  %v6538_v3 = vld [vmem:[#allocation5 + $0xa98] ss:$12 sps:$4 sm:$0xff]  }
  0xed   :  { %4264 = vmatprep.subr.bf16.mxu1 %v6470_v5  ;;  %v6543_v4 = vld [vmem:[#allocation5 + $0x904] ss:$12 sps:$4 sm:$0xff]  }
  0xee   :  { %v6546_v5 = vld [vmem:[#allocation5 + $0xa84] ss:$12 sps:$4 sm:$0xff]  }
  0xef   :  { %4224 = vmatpush2.bf16.msra.mxu0 %v6465_v8  ;;  %v6541_v8 = vld [vmem:[#allocation5 + $0x900] ss:$12 sps:$4 sm:$0xff]  }
  0xf0   :  { %4265 = vmatpush2.bf16.msra.mxu1 %v6468_v9  ;;  %4225 = vmatprep.subr.bf16.mxu0 %v6473_v10  ;;  %v6544_v9 = vld [vmem:[#allocation5 + $0xa80] ss:$12 sps:$4 sm:$0xff]  }
  0xf1   :  { %4266 = vmatprep.subr.bf16.mxu1 %v6476_v11  ;;  %v6549_v10 = vld [vmem:[#allocation5 + $0xa6c] ss:$12 sps:$4 sm:$0xff]  }
  0xf2   :  { %v6552_v11 = vld [vmem:[#allocation5 + $0xbec] ss:$12 sps:$4 sm:$0xff]  }
  0xf3   :  { %4226 = vmatpush2.bf16.msra.mxu0 %v6471_v12  ;;  %v6547_v12 = vld [vmem:[#allocation5 + $0xa68] ss:$12 sps:$4 sm:$0xff]  }
  0xf4   :  { %4267 = vmatpush2.bf16.msra.mxu1 %v6474_v13  ;;  %4227 = vmatprep.subr.bf16.mxu0 %v6479_v14  ;;  %v6550_v13 = vld [vmem:[#allocation5 + $0xbe8] ss:$12 sps:$4 sm:$0xff]  }
  0xf5   :  { %4268 = vmatprep.subr.bf16.mxu1 %v6482_v15  ;;  %v6555_v14 = vld [vmem:[#allocation5 + $0xa54] ss:$12 sps:$4 sm:$0xff]  }
  0xf6   :  { %v6558_v15 = vld [vmem:[#allocation5 + $0xbd4] ss:$12 sps:$4 sm:$0xff]  }
  0xf7   :  { %4228 = vmatpush2.bf16.msra.mxu0 %v6477_v18  ;;  %v6553_v18 = vld [vmem:[#allocation5 + $0xa50] ss:$12 sps:$4 sm:$0xff]  }
  0xf8   :  { %4269 = vmatpush2.bf16.msra.mxu1 %v6480_v19  ;;  %4229 = vmatprep.subr.bf16.mxu0 %v6485_v20  ;;  %v6556_v19 = vld [vmem:[#allocation5 + $0xbd0] ss:$12 sps:$4 sm:$0xff]  }
  0xf9   :  { %4270 = vmatprep.subr.bf16.mxu1 %v6488_v21  ;;  %v6561_v20 = vld [vmem:[#allocation5 + $0xa3c] ss:$12 sps:$4 sm:$0xff]  }
  0xfa   :  { %v6564_v21 = vld [vmem:[#allocation5 + $0xbbc] ss:$12 sps:$4 sm:$0xff]  }
  0xfb   :  { %4230 = vmatpush2.bf16.msra.mxu0 %v6483_v26  ;;  %v6559_v26 = vld [vmem:[#allocation5 + $0xa38] ss:$12 sps:$4 sm:$0xff]  }
  0xfc   :  { %4271 = vmatpush2.bf16.msra.mxu1 %v6486_v27  ;;  %4231 = vmatprep.subr.bf16.mxu0 %v6491_v28  ;;  %v6562_v27 = vld [vmem:[#allocation5 + $0xbb8] ss:$12 sps:$4 sm:$0xff]  }
  0xfd   :  { %4272 = vmatprep.subr.bf16.mxu1 %v6494_v29  ;;  %v6567_v28 = vld [vmem:[#allocation5 + $0xa24] ss:$12 sps:$4 sm:$0xff]  }
  0xfe   :  { %v6570_v29 = vld [vmem:[#allocation5 + $0xba4] ss:$12 sps:$4 sm:$0xff]  }
  0xff   :  { %4232 = vmatpush2.bf16.msra.mxu0 %v6489_v30  ;;  %v6565_v30 = vld [vmem:[#allocation5 + $0xa20] ss:$12 sps:$4 sm:$0xff]  }
 0x100   :  { %4273 = vmatpush2.bf16.msra.mxu1 %v6492_v31  ;;  %4283 = vmatprep.subr.bf16.mxu0 %v6501_v32  ;;  %v6568_v31 = vld [vmem:[#allocation5 + $0xba0] ss:$12 sps:$4 sm:$0xff]  }
 0x101   :  { %4324 = vmatprep.subr.bf16.mxu1 %v6504_v33  ;;  %v6573_v32 = vld [vmem:[#allocation5 + $0xa0c] ss:$12 sps:$4 sm:$0xff]  }
 0x102   :  { %4234 = vmatmul.mubr.bf16.vlgmr.msra.gmra.mxu0 %v7235_v38  ;;  %v6576_v33 = vld [vmem:[#allocation5 + $0xb8c] ss:$12 sps:$4 sm:$0xff]  }
 0x103   :  { %4275 = vmatmul.mubr.bf16.vlgmr.msra.gmra.mxu1 %v7239_v39  ;;  %4284 = vmatpush1.bf16.msra.mxu0 %v6499_v34  ;;  %v6571_v34 = vld [vmem:[#allocation5 + $0xa08] ss:$12 sps:$4 sm:$0xff]  }
 0x104   :  { %4325 = vmatpush1.bf16.msra.mxu1 %v6502_v41  ;;  %4285 = vmatprep.subr.bf16.mxu0 %v6507_v42  ;;  %v6574_v41 = vld [vmem:[#allocation5 + $0xb88] ss:$12 sps:$4 sm:$0xff]  }
 0x105   :  { %4326 = vmatprep.subr.bf16.mxu1 %v6510_v43  ;;  %4315 = vmatprep.mubr.bf16.mxu0 %v7245_v44  ;;  %v6579_v42 = vld [vmem:[#allocation5 + $0x9f4] ss:$12 sps:$4 sm:$0xff]  }
 0x106   :  { %4356 = vmatprep.mubr.bf16.mxu1 %v7249_v22  ;;  %v6582_v43 = vld [vmem:[#allocation5 + $0xb74] ss:$12 sps:$4 sm:$0xff]  }
 0x107   :  { %4286 = vmatpush1.bf16.msra.mxu0 %v6505_v23  ;;  %v6577_v23 = vld [vmem:[#allocation5 + $0x9f0] ss:$12 sps:$4 sm:$0xff]  }
 0x108   :  { %4327 = vmatpush1.bf16.msra.mxu1 %v6508_v45  ;;  %4287 = vmatprep.subr.bf16.mxu0 %v6513_v46  ;;  %v6580_v45 = vld [vmem:[#allocation5 + $0xb70] ss:$12 sps:$4 sm:$0xff]  }
 0x109   :  { %4328 = vmatprep.subr.bf16.mxu1 %v6516_v48  ;;  %v6585_v46 = vld [vmem:[#allocation5 + $0x9dc] ss:$12 sps:$4 sm:$0xff]   ;;  %v866_v48 = vlaneseq }
 0x10b   :  { %4288 = vmatpush1.bf16.msra.mxu0 %v6511_v49  ;;  %v6588_v49 = vld [vmem:[#allocation5 + $0xb5c] ss:$12 sps:$4 sm:$0xff]  }
 0x10c   :  { %4329 = vmatpush1.bf16.msra.mxu1 %v6514_v50  ;;  %4289 = vmatprep.subr.bf16.mxu0 %v6519_v52  ;;  %v6583_v50 = vld [vmem:[#allocation5 + $0x9d8] ss:$12 sps:$4 sm:$0xff]  }
 0x10d   :  { %4330 = vmatprep.subr.bf16.mxu1 %v6522_v53  ;;  %v6586_v52 = vld [vmem:[#allocation5 + $0xb58] ss:$12 sps:$4 sm:$0xff]  }
 0x10e   :  { %v6591_v53 = vld [vmem:[#allocation5 + $0x9c4] ss:$12 sps:$4 sm:$0xff]  }
 0x10f   :  { %4290 = vmatpush1.bf16.msra.mxu0 %v6517_v54  ;;  %v7255_v54 = vshrl.u32 %v866_v48, 7  ;;  %v6623_v48 = vld [vmem:[#allocation5 + $0xc48] ss:$12 sps:$4 sm:$0xff]  }
 0x110   :  { %4331 = vmatpush1.bf16.msra.mxu1 %v6520_v55  ;;  %4291 = vmatprep.subr.bf16.mxu0 %v6525_v56  ;;  %v6594_v55 = vld [vmem:[#allocation5 + $0xb44] ss:$12 sps:$4 sm:$0xff]   ;;  %v6589_v56 = vld [vmem:[#allocation5 + $0x9c0] ss:$12 sps:$4 sm:$0xff]  }
 0x111   :  { %4332 = vmatprep.subr.bf16.mxu1 %v6528_v57  ;;  %v6592_v57 = vld [vmem:[#allocation5 + $0xb40] ss:$12 sps:$4 sm:$0xff]  }
 0x113   :  { %4292 = vmatpush1.bf16.msra.mxu0 %v6523_v58  ;;  %v864_v58 = vld [vmem:[#allocation7] sm:$0x7] }
 0x114   :  { %4333 = vmatpush1.bf16.msra.mxu1 %v6526_v59  ;;  %4293 = vmatprep.subr.bf16.mxu0 %v6531_v60  ;;  %v868_v59 = vsub.s32 0, %v7255_v54  ;;  %v6601_v60 = vld [vmem:[#allocation5 + $0xcac] ss:$12 sps:$4 sm:$0xff]  }
 0x115   :  { %4334 = vmatprep.subr.bf16.mxu1 %v6534_v61  ;;  %v6604_v61 = vld [vmem:[#allocation5 + $0xe2c] ss:$12 sps:$4 sm:$0xff]  }
 0x117   :  { %4294 = vmatpush1.bf16.msra.mxu0 %v6529_v62  ;;  %v6599_v62 = vld [vmem:[#allocation5 + $0xca8] ss:$12 sps:$4 sm:$0xff]  }
 0x118   :  { %4335 = vmatpush1.bf16.msra.mxu1 %v6532_v63  ;;  %4295 = vmatprep.subr.bf16.mxu0 %v6537_v0  ;;  %v872_v63 = vsub.s32 1, %v7255_v54  ;;  %v7261_v0 = vcombine.low %v7231_v35, %v7231_v35 }
 0x119   :  { %4336 = vmatprep.subr.bf16.mxu1 %v6540_v1  ;;  %v7265_v1 = vcombine.low %v7241_v40, %v7241_v40 }
 0x11b   :  { %4296 = vmatpush1.bf16.msra.mxu0 %v6535_v2  ;;  %v7267_v2 = vld [vmem:[#allocation2 + $0x40] sm:$0xff] }
 0x11c   :  { %4337 = vmatpush1.bf16.msra.mxu1 %v6538_v3  ;;  %4297 = vmatprep.subr.bf16.mxu0 %v6543_v4  ;;  %v7269_v3 = vld [vmem:[#allocation2 + $0x48] sm:$0xff]  ;;  %v869_v4 = vrot.slane %v864_v58, %v868_v59  ;;  %v7273_v35 = vcombine.high %v7267_v2, %v7267_v2  ;;  %v6638_v59 = vld [vmem:[#allocation5 + $0xd98] ss:$12 sps:$4 sm:$0xff]  }
 0x11d   :  { %4338 = vmatprep.subr.bf16.mxu1 %v6546_v5  ;;  %v6602_v5 = vld [vmem:[#allocation5 + $0xe28] ss:$12 sps:$4 sm:$0xff]   ;;  %v7277_v40 = vcombine.high %v7269_v3, %v7269_v3 }
 0x11f   :  { %4298 = vmatpush1.bf16.msra.mxu0 %v6541_v8  ;;  %v6607_v8 = vld [vmem:[#allocation5 + $0xc94] ss:$12 sps:$4 sm:$0xff]  }
 0x120   :  { %4339 = vmatpush1.bf16.msra.mxu1 %v6544_v9  ;;  %4299 = vmatprep.subr.bf16.mxu0 %v6549_v10  ;;  %v6610_v9 = vld [vmem:[#allocation5 + $0xe14] ss:$12 sps:$4 sm:$0xff]   ;;  %v873_v10 = vrot.slane %v864_v58, %v872_v63  ;;  %v6635_v58 = vld [vmem:[#allocation5 + $0xc18] ss:$12 sps:$4 sm:$0xff]  }
 0x121   :  { %4340 = vmatprep.subr.bf16.mxu1 %v6552_v11  ;;  %v6644_v63 = vld [vmem:[#allocation5 + $0xd80] ss:$12 sps:$4 sm:$0xff]  }
 0x123   :  { %4300 = vmatpush2.bf16.msra.mxu0 %v6547_v12 }
 0x124   :  { %4341 = vmatpush2.bf16.msra.mxu1 %v6550_v13  ;;  %4301 = vmatprep.subr.bf16.mxu0 %v6555_v14  ;;  %v6605_v13 = vld [vmem:[#allocation5 + $0xc90] ss:$12 sps:$4 sm:$0xff]  }
 0x125   :  { %4342 = vmatprep.subr.bf16.mxu1 %v6558_v15  ;;  %v6608_v14 = vld [vmem:[#allocation5 + $0xe10] ss:$12 sps:$4 sm:$0xff]  }
 0x127   :  { %4302 = vmatpush2.bf16.msra.mxu0 %v6553_v18  ;;  %v6613_v18 = vld [vmem:[#allocation5 + $0xc7c] ss:$12 sps:$4 sm:$0xff]  }
 0x128   :  { %4343 = vmatpush2.bf16.msra.mxu1 %v6556_v19  ;;  %4303 = vmatprep.subr.bf16.mxu0 %v6561_v20 }
 0x129   :  { %4344 = vmatprep.subr.bf16.mxu1 %v6564_v21  ;;  %v6616_v21 = vld [vmem:[#allocation5 + $0xdfc] ss:$12 sps:$4 sm:$0xff]  }
 0x12b   :  { %4304 = vmatpush2.bf16.msra.mxu0 %v6559_v26 }
 0x12c   :  { %4345 = vmatpush2.bf16.msra.mxu1 %v6562_v27  ;;  %4305 = vmatprep.subr.bf16.mxu0 %v6567_v28  ;;  %v6611_v28 = vld [vmem:[#allocation5 + $0xc78] ss:$12 sps:$4 sm:$0xff]  }
 0x12d   :  { %4346 = vmatprep.subr.bf16.mxu1 %v6570_v29 }
 0x12f   :  { %4306 = vmatpush2.bf16.msra.mxu0 %v6565_v30 }
 0x130   :  { %4347 = vmatpush2.bf16.msra.mxu1 %v6568_v31  ;;  %4307 = vmatprep.subr.bf16.mxu0 %v6573_v32  ;;  %v6614_v31 = vld [vmem:[#allocation5 + $0xdf8] ss:$12 sps:$4 sm:$0xff]  }
 0x131   :  { %4348 = vmatprep.subr.bf16.mxu1 %v6576_v33  ;;  %v6619_v33 = vld [vmem:[#allocation5 + $0xc64] ss:$12 sps:$4 sm:$0xff]  }
 0x133   :  { %4308 = vmatpush2.bf16.msra.mxu0 %v6571_v34 }
 0x134   :  { %4349 = vmatpush2.bf16.msra.mxu1 %v6574_v41  ;;  %4309 = vmatprep.subr.bf16.mxu0 %v6579_v42  ;;  %v6622_v42 = vld [vmem:[#allocation5 + $0xde4] ss:$12 sps:$4 sm:$0xff]  }
 0x135   :  { %4350 = vmatprep.subr.bf16.mxu1 %v6582_v43  ;;  %v6617_v43 = vld [vmem:[#allocation5 + $0xc60] ss:$12 sps:$4 sm:$0xff]  }
 0x137   :  { %4310 = vmatpush2.bf16.msra.mxu0 %v6577_v23  ;;  %v6620_v23 = vld [vmem:[#allocation5 + $0xde0] ss:$12 sps:$4 sm:$0xff]  }
 0x138   :  { %4351 = vmatpush2.bf16.msra.mxu1 %v6580_v45  ;;  %4311 = vmatprep.subr.bf16.mxu0 %v6585_v46  ;;  %v6625_v45 = vld [vmem:[#allocation5 + $0xc4c] ss:$12 sps:$4 sm:$0xff]  }
 0x139   :  { %4352 = vmatprep.subr.bf16.mxu1 %v6588_v49  ;;  %v6628_v46 = vld [vmem:[#allocation5 + $0xdcc] ss:$12 sps:$4 sm:$0xff]   ;;  %v6626_v49 = vld [vmem:[#allocation5 + $0xdc8] ss:$12 sps:$4 sm:$0xff]  }
 0x13b   :  { %4312 = vmatpush2.bf16.msra.mxu0 %v6583_v50  ;;  %v6631_v50 = vld [vmem:[#allocation5 + $0xc34] ss:$12 sps:$4 sm:$0xff]  }
 0x13c   :  { %4353 = vmatpush2.bf16.msra.mxu1 %v6586_v52  ;;  %4313 = vmatprep.subr.bf16.mxu0 %v6591_v53  ;;  %v6634_v52 = vld [vmem:[#allocation5 + $0xdb4] ss:$12 sps:$4 sm:$0xff]   ;;  %v6629_v53 = vld [vmem:[#allocation5 + $0xc30] ss:$12 sps:$4 sm:$0xff]  }
 0x13d   :  { %4354 = vmatprep.subr.bf16.mxu1 %v6594_v55  ;;  %v6632_v55 = vld [vmem:[#allocation5 + $0xdb0] ss:$12 sps:$4 sm:$0xff]  }
 0x13f   :  { %4314 = vmatpush2.bf16.msra.mxu0 %v6589_v56  ;;  %v6637_v56 = vld [vmem:[#allocation5 + $0xc1c] ss:$12 sps:$4 sm:$0xff]  }
 0x140   :  { %4355 = vmatpush2.bf16.msra.mxu1 %v6592_v57  ;;  %4365 = vmatprep.subr.bf16.mxu0 %v6601_v60  ;;  %v6640_v57 = vld [vmem:[#allocation5 + $0xd9c] ss:$12 sps:$4 sm:$0xff]   ;;  %v6643_v60 = vld [vmem:[#allocation5 + $0xc04] ss:$12 sps:$4 sm:$0xff]  }
 0x141   :  { %4406 = vmatprep.subr.bf16.mxu1 %v6604_v61  ;;  %v6646_v61 = vld [vmem:[#allocation5 + $0xd84] ss:$12 sps:$4 sm:$0xff]  }
 0x142   :  { %v4071_v11 = vpop.f32.mrf.mxu0  ;;  %4316 = vmatmul.mubr.bf16.vlgmr.msra.gmra.mxu0 %v7261_v0 }
 0x143   :  { %v4112_v12 = vpop.f32.mrf.mxu1  ;;  %4357 = vmatmul.mubr.bf16.vlgmr.msra.gmra.mxu1 %v7265_v1  ;;  %v4072_v15 = vadd.f32 %v4071_v11, %v869_v4  ;;  %4366 = vmatpush1.bf16.msra.mxu0 %v6599_v62  ;;  %v6641_v62 = vld [vmem:[#allocation5 + $0xc00] ss:$12 sps:$4 sm:$0xff]  }
 0x144   :  { %4407 = vmatpush1.bf16.msra.mxu1 %v6602_v5  ;;  %v4073_v19 = vpop.f32.mrf.mxu0  ;;  %4367 = vmatprep.subr.bf16.mxu0 %v6607_v8  ;;  %v6649_v4 = vld [vmem:[#allocation5 + $0xd6c] ss:$12 sps:$4 sm:$0xff]   ;;  %v6647_v8 = vld [vmem:[#allocation5 + $0xd68] ss:$12 sps:$4 sm:$0xff]  }
 0x145   :  { %v4114_v20 = vpop.f32.mrf.mxu1  ;;  %4408 = vmatprep.subr.bf16.mxu1 %v6610_v9  ;;  %v7281_v26 = vadd.f32 %v4112_v12, %v4072_v15  ;;  %v4074_v27 = vadd.f32 %v4073_v19, %v873_v10  ;;  %4397 = vmatprep.mubr.bf16.mxu0 %v7273_v35  ;;  %v6652_v5 = vld [vmem:[#allocation5 + $0xeec] ss:$12 sps:$4 sm:$0xff]   ;;  %v6650_v9 = vld [vmem:[#allocation5 + $0xee8] ss:$12 sps:$4 sm:$0xff]   ;;  %v6653_v12 = vld [vmem:[#allocation5 + $0xd50] ss:$12 sps:$4 sm:$0xff]  }
 0x146   :  { %4438 = vmatprep.mubr.bf16.mxu1 %v7277_v40  ;;  %v4075_v29 = vpop.f32.mrf.mxu0  ;;  %v6655_v10 = vld [vmem:[#allocation5 + $0xd54] ss:$12 sps:$4 sm:$0xff]   ;;  %v6664_v15 = vld [vmem:[#allocation5 + $0xebc] ss:$12 sps:$4 sm:$0xff]   ;;  %v6662_v19 = vld [vmem:[#allocation5 + $0xeb8] ss:$12 sps:$4 sm:$0xff]  }
 0x147   :  { %v4116_v30 = vpop.f32.mrf.mxu1  ;;  %v7285_v32 = vadd.f32 %v4114_v20, %v4074_v27  ;;  %4368 = vmatpush1.bf16.msra.mxu0 %v6605_v13  ;;  %v6658_v11 = vld [vmem:[#allocation5 + $0xed4] ss:$12 sps:$4 sm:$0xff]   ;;  %v6656_v13 = vld [vmem:[#allocation5 + $0xed0] ss:$12 sps:$4 sm:$0xff]   ;;  %v6673_v29 = vld [vmem:[#allocation5 + $0xd0c] ss:$12 sps:$4 sm:$0xff]  }
 0x148   :  { %4409 = vmatpush1.bf16.msra.mxu1 %v6608_v14  ;;  %v4076_v34 = vpop.f32.mrf.mxu0  ;;  %4369 = vmatprep.subr.bf16.mxu0 %v6613_v18  ;;  %v6661_v14 = vld [vmem:[#allocation5 + $0xd3c] ss:$12 sps:$4 sm:$0xff]   ;;  %v6659_v18 = vld [vmem:[#allocation5 + $0xd38] ss:$12 sps:$4 sm:$0xff]   ;;  %v6665_v27 = vld [vmem:[#allocation5 + $0xd20] ss:$12 sps:$4 sm:$0xff]  }
 0x149   :  { %v4117_v41 = vpop.f32.mrf.mxu1  ;;  %4410 = vmatprep.subr.bf16.mxu1 %v6616_v21  ;;  %v6667_v20 = vld [vmem:[#allocation5 + $0xd24] ss:$12 sps:$4 sm:$0xff]   ;;  %v6676_v30 = vld [vmem:[#allocation5 + $0xe8c] ss:$12 sps:$4 sm:$0xff]   ;;  %v6679_v34 = vld [vmem:[#allocation5 + $0xcf4] ss:$12 sps:$4 sm:$0xff]  }
 0x14a   :  { %v6670_v21 = vld [vmem:[#allocation5 + $0xea4] ss:$12 sps:$4 sm:$0xff]   ;;  %v6682_v41 = vld [vmem:[#allocation5 + $0xe74] ss:$12 sps:$4 sm:$0xff]  }
 0x14b   :  { %4370 = vmatpush1.bf16.msra.mxu0 %v6611_v28  ;;  %v6668_v28 = vld [vmem:[#allocation5 + $0xea0] ss:$12 sps:$4 sm:$0xff]  }
 0x14c   :  { %4411 = vmatpush1.bf16.msra.mxu1 %v6614_v31  ;;  %4371 = vmatprep.subr.bf16.mxu0 %v6619_v33  ;;  %v6671_v31 = vld [vmem:[#allocation5 + $0xd08] ss:$12 sps:$4 sm:$0xff]  }
 0x14d   :  { %4412 = vmatprep.subr.bf16.mxu1 %v6622_v42  ;;  %v6674_v33 = vld [vmem:[#allocation5 + $0xe88] ss:$12 sps:$4 sm:$0xff]   ;;  %v6677_v42 = vld [vmem:[#allocation5 + $0xcf0] ss:$12 sps:$4 sm:$0xff]  }
 0x14f   :  { %4372 = vmatpush1.bf16.msra.mxu0 %v6617_v43  ;;  %v6680_v43 = vld [vmem:[#allocation5 + $0xe70] ss:$12 sps:$4 sm:$0xff]  }
 0x150   :  { %4413 = vmatpush1.bf16.msra.mxu1 %v6620_v23  ;;  %4373 = vmatprep.subr.bf16.mxu0 %v6625_v45  ;;  %v6685_v23 = vld [vmem:[#allocation5 + $0xcdc] ss:$12 sps:$4 sm:$0xff]  }
 0x151   :  { %4414 = vmatprep.subr.bf16.mxu1 %v6628_v46  ;;  %v6688_v45 = vld [vmem:[#allocation5 + $0xe5c] ss:$12 sps:$4 sm:$0xff]   ;;  %v6683_v46 = vld [vmem:[#allocation5 + $0xcd8] ss:$12 sps:$4 sm:$0xff]  }
 0x153   :  { %4374 = vmatpush1.bf16.msra.mxu0 %v6623_v48  ;;  %v6686_v48 = vld [vmem:[#allocation5 + $0xe58] ss:$12 sps:$4 sm:$0xff]  }
 0x154   :  { %4415 = vmatpush1.bf16.msra.mxu1 %v6626_v49  ;;  %4375 = vmatprep.subr.bf16.mxu0 %v6631_v50  ;;  %v6691_v49 = vld [vmem:[#allocation5 + $0xcc4] ss:$12 sps:$4 sm:$0xff]  }
 0x155   :  { %4416 = vmatprep.subr.bf16.mxu1 %v6634_v52  ;;  %v6694_v50 = vld [vmem:[#allocation5 + $0xe44] ss:$12 sps:$4 sm:$0xff]   ;;  %v6689_v52 = vld [vmem:[#allocation5 + $0xcc0] ss:$12 sps:$4 sm:$0xff]  }
 0x157   :  { %4376 = vmatpush1.bf16.msra.mxu0 %v6629_v53  ;;  %v6692_v53 = vld [vmem:[#allocation5 + $0xe40] ss:$12 sps:$4 sm:$0xff]  }
 0x158   :  { %4417 = vmatpush1.bf16.msra.mxu1 %v6632_v55  ;;  %4377 = vmatprep.subr.bf16.mxu0 %v6637_v56  ;;  %v6701_v55 = vld [vmem:[#allocation5 + $0xfac] ss:$12 sps:$4 sm:$0xff]  }
 0x159   :  { %4418 = vmatprep.subr.bf16.mxu1 %v6640_v57  ;;  %v6704_v56 = vld [vmem:[#allocation5 + $0x112c] ss:$12 sps:$4 sm:$0xff]   ;;  %v6699_v57 = vld [vmem:[#allocation5 + $0xfa8] ss:$12 sps:$4 sm:$0xff]  }
 0x15b   :  { %4378 = vmatpush1.bf16.msra.mxu0 %v6635_v58  ;;  %v6702_v58 = vld [vmem:[#allocation5 + $0x1128] ss:$12 sps:$4 sm:$0xff]  }
 0x15c   :  { %4419 = vmatpush1.bf16.msra.mxu1 %v6638_v59  ;;  %4379 = vmatprep.subr.bf16.mxu0 %v6643_v60  ;;  %v7287_v59 = vld [vmem:[#allocation2 + $0x50] sm:$0xff]  ;;  %v7291_v60 = vcombine.low %v7267_v2, %v7267_v2 }
 0x15d   :  { %4420 = vmatprep.subr.bf16.mxu1 %v6646_v61  ;;  %v7295_v61 = vcombine.low %v7269_v3, %v7269_v3 }
 0x15f   :  { %4380 = vmatpush1.bf16.msra.mxu0 %v6641_v62  ;;  %v7297_v62 = vld [vmem:[#allocation2 + $0x58] sm:$0xff] }
 0x160   :  { %4421 = vmatpush1.bf16.msra.mxu1 %v6644_v63  ;;  %4381 = vmatprep.subr.bf16.mxu0 %v6649_v4  ;;  %v6707_v63 = vld [vmem:[#allocation5 + $0xf94] ss:$12 sps:$4 sm:$0xff]   ;;  %v7305_v2 = vcombine.high %v7297_v62, %v7297_v62 }
 0x161   :  { %4422 = vmatprep.subr.bf16.mxu1 %v6652_v5  ;;  %v6710_v4 = vld [vmem:[#allocation5 + $0x1114] ss:$12 sps:$4 sm:$0xff]   ;;  %v6705_v5 = vld [vmem:[#allocation5 + $0xf90] ss:$12 sps:$4 sm:$0xff]  }
 0x163   :  { %4382 = vmatpush2.bf16.msra.mxu0 %v6647_v8  ;;  %v7301_v8 = vcombine.high %v7287_v59, %v7287_v59 }
 0x164   :  { %4423 = vmatpush2.bf16.msra.mxu1 %v6650_v9  ;;  %4383 = vmatprep.subr.bf16.mxu0 %v6655_v10  ;;  %v6708_v10 = vld [vmem:[#allocation5 + $0x1110] ss:$12 sps:$4 sm:$0xff]  }
 0x165   :  { %4424 = vmatprep.subr.bf16.mxu1 %v6658_v11 }
 0x167   :  { %4384 = vmatpush2.bf16.msra.mxu0 %v6653_v12  ;;  %v6713_v12 = vld [vmem:[#allocation5 + $0xf7c] ss:$12 sps:$4 sm:$0xff]  }
 0x168   :  { %4425 = vmatpush2.bf16.msra.mxu1 %v6656_v13  ;;  %4385 = vmatprep.subr.bf16.mxu0 %v6661_v14 }
 0x169   :  { %4426 = vmatprep.subr.bf16.mxu1 %v6664_v15  ;;  %v6716_v15 = vld [vmem:[#allocation5 + $0x10fc] ss:$12 sps:$4 sm:$0xff]  }
 0x16b   :  { %4386 = vmatpush2.bf16.msra.mxu0 %v6659_v18 }
 0x16c   :  { %4427 = vmatpush2.bf16.msra.mxu1 %v6662_v19  ;;  %4387 = vmatprep.subr.bf16.mxu0 %v6667_v20  ;;  %v6711_v20 = vld [vmem:[#allocation5 + $0xf78] ss:$12 sps:$4 sm:$0xff]  }
 0x16d   :  { %4428 = vmatprep.subr.bf16.mxu1 %v6670_v21 }
 0x16f   :  { %4388 = vmatpush2.bf16.msra.mxu0 %v6665_v27 }
 0x170   :  { %4429 = vmatpush2.bf16.msra.mxu1 %v6668_v28  ;;  %4389 = vmatprep.subr.bf16.mxu0 %v6673_v29  ;;  %v6719_v29 = vld [vmem:[#allocation5 + $0xf64] ss:$12 sps:$4 sm:$0xff]  }
 0x171   :  { %4430 = vmatprep.subr.bf16.mxu1 %v6676_v30 }
 0x173   :  { %4390 = vmatpush2.bf16.msra.mxu0 %v6671_v31 }
 0x174   :  { %4431 = vmatpush2.bf16.msra.mxu1 %v6674_v33  ;;  %4391 = vmatprep.subr.bf16.mxu0 %v6679_v34  ;;  %v6722_v33 = vld [vmem:[#allocation5 + $0x10e4] ss:$12 sps:$4 sm:$0xff]   ;;  %v6717_v34 = vld [vmem:[#allocation5 + $0xf60] ss:$12 sps:$4 sm:$0xff]  }
 0x175   :  { %4432 = vmatprep.subr.bf16.mxu1 %v6682_v41  ;;  %v6725_v41 = vld [vmem:[#allocation5 + $0xf4c] ss:$12 sps:$4 sm:$0xff]  }
 0x177   :  { %4392 = vmatpush2.bf16.msra.mxu0 %v6677_v42  ;;  %v6728_v42 = vld [vmem:[#allocation5 + $0x10cc] ss:$12 sps:$4 sm:$0xff]  }
 0x178   :  { %4433 = vmatpush2.bf16.msra.mxu1 %v6680_v43  ;;  %4393 = vmatprep.subr.bf16.mxu0 %v6685_v23  ;;  %v6723_v43 = vld [vmem:[#allocation5 + $0xf48] ss:$12 sps:$4 sm:$0xff]  }
 0x179   :  { %4434 = vmatprep.subr.bf16.mxu1 %v6688_v45  ;;  %v6726_v23 = vld [vmem:[#allocation5 + $0x10c8] ss:$12 sps:$4 sm:$0xff]  }
 0x17a   :  { %v6731_v45 = vld [vmem:[#allocation5 + $0xf34] ss:$12 sps:$4 sm:$0xff]  }
 0x17b   :  { %4394 = vmatpush2.bf16.msra.mxu0 %v6683_v46  ;;  %v6734_v46 = vld [vmem:[#allocation5 + $0x10b4] ss:$12 sps:$4 sm:$0xff]  }
 0x17c   :  { %4435 = vmatpush2.bf16.msra.mxu1 %v6686_v48  ;;  %4395 = vmatprep.subr.bf16.mxu0 %v6691_v49  ;;  %v6729_v48 = vld [vmem:[#allocation5 + $0xf30] ss:$12 sps:$4 sm:$0xff]  }
 0x17d   :  { %4436 = vmatprep.subr.bf16.mxu1 %v6694_v50  ;;  %v6732_v49 = vld [vmem:[#allocation5 + $0x10b0] ss:$12 sps:$4 sm:$0xff]  }
 0x17e   :  { %v6737_v50 = vld [vmem:[#allocation5 + $0xf1c] ss:$12 sps:$4 sm:$0xff]  }
 0x17f   :  { %4396 = vmatpush2.bf16.msra.mxu0 %v6689_v52  ;;  %v6740_v52 = vld [vmem:[#allocation5 + $0x109c] ss:$12 sps:$4 sm:$0xff]  }
 0x180   :  { %4437 = vmatpush2.bf16.msra.mxu1 %v6692_v53  ;;  %4447 = vmatprep.subr.bf16.mxu0 %v6701_v55  ;;  %v6735_v53 = vld [vmem:[#allocation5 + $0xf18] ss:$12 sps:$4 sm:$0xff]  }
 0x181   :  { %4488 = vmatprep.subr.bf16.mxu1 %v6704_v56  ;;  %v6738_v55 = vld [vmem:[#allocation5 + $0x1098] ss:$12 sps:$4 sm:$0xff]  }
 0x182   :  { %v4153_v9 = vpop.f32.mrf.mxu0  ;;  %4398 = vmatmul.mubr.bf16.vlgmr.msra.gmra.mxu0 %v7291_v60  ;;  %v6743_v56 = vld [vmem:[#allocation5 + $0xf04] ss:$12 sps:$4 sm:$0xff]  }
 0x183   :  { %v4194_v3 = vpop.f32.mrf.mxu1  ;;  %4439 = vmatmul.mubr.bf16.vlgmr.msra.gmra.mxu1 %v7295_v61  ;;  %v4154_v11 = vadd.f32 %v4153_v9, %v7281_v26  ;;  %4448 = vmatpush1.bf16.msra.mxu0 %v6699_v57  ;;  %v6714_v26 = vld [vmem:[#allocation5 + $0x10f8] ss:$12 sps:$4 sm:$0xff]   ;;  %v6747_v9 = vld [vmem:[#allocation5 + $0x1068] ss:$12 sps:$4 sm:$0xff]  }
 0x184   :  { %4489 = vmatpush1.bf16.msra.mxu1 %v6702_v58  ;;  %v4155_v13 = vpop.f32.mrf.mxu0  ;;  %4449 = vmatprep.subr.bf16.mxu0 %v6707_v63  ;;  %v6746_v57 = vld [vmem:[#allocation5 + $0x1084] ss:$12 sps:$4 sm:$0xff]   ;;  %v6741_v58 = vld [vmem:[#allocation5 + $0xf00] ss:$12 sps:$4 sm:$0xff]  }
 0x185   :  { %v4196_v14 = vpop.f32.mrf.mxu1  ;;  %4490 = vmatprep.subr.bf16.mxu1 %v6710_v4  ;;  %v7310_v18 = vadd.f32 %v4194_v3, %v4154_v11  ;;  %v4156_v19 = vadd.f32 %v4155_v13, %v7285_v32  ;;  %4479 = vmatprep.mubr.bf16.mxu0 %v7301_v8  ;;  %v6720_v32 = vld [vmem:[#allocation5 + $0x10e0] ss:$12 sps:$4 sm:$0xff]   ;;  %v6750_v3 = vld [vmem:[#allocation5 + $0x11e8] ss:$12 sps:$4 sm:$0xff]   ;;  %v6756_v13 = vld [vmem:[#allocation5 + $0x11d0] ss:$12 sps:$4 sm:$0xff]  }
 0x186   :  { %4520 = vmatprep.mubr.bf16.mxu1 %v7305_v2  ;;  %v4157_v21 = vpop.f32.mrf.mxu0  ;;  %v6744_v63 = vld [vmem:[#allocation5 + $0x1080] ss:$12 sps:$4 sm:$0xff]  }
 0x187   :  { %v4198_v27 = vpop.f32.mrf.mxu1  ;;  %v7315_v28 = vadd.f32 %v4196_v14, %v4156_v19  ;;  %4450 = vmatpush1.bf16.msra.mxu0 %v6705_v5  ;;  %v6749_v4 = vld [vmem:[#allocation5 + $0x106c] ss:$12 sps:$4 sm:$0xff]   ;;  %v6758_v11 = vld [vmem:[#allocation5 + $0x11d4] ss:$12 sps:$4 sm:$0xff]   ;;  %v6761_v14 = vld [vmem:[#allocation5 + $0x103c] ss:$12 sps:$4 sm:$0xff]  }
 0x188   :  { %4491 = vmatpush1.bf16.msra.mxu1 %v6708_v10  ;;  %v4158_v30 = vpop.f32.mrf.mxu0  ;;  %4451 = vmatprep.subr.bf16.mxu0 %v6713_v12  ;;  %v6752_v5 = vld [vmem:[#allocation5 + $0x11ec] ss:$12 sps:$4 sm:$0xff]   ;;  %v6755_v10 = vld [vmem:[#allocation5 + $0x1054] ss:$12 sps:$4 sm:$0xff]   ;;  %v6753_v12 = vld [vmem:[#allocation5 + $0x1050] ss:$12 sps:$4 sm:$0xff]  }
 0x189   :  { %v4199_v31 = vpop.f32.mrf.mxu1  ;;  %4492 = vmatprep.subr.bf16.mxu1 %v6716_v15  ;;  %v6764_v15 = vld [vmem:[#allocation5 + $0x11bc] ss:$12 sps:$4 sm:$0xff]   ;;  %v6759_v19 = vld [vmem:[#allocation5 + $0x1038] ss:$12 sps:$4 sm:$0xff]  }
 0x18a   :  { %v6767_v21 = vld [vmem:[#allocation5 + $0x1024] ss:$12 sps:$4 sm:$0xff]   ;;  %v6773_v30 = vld [vmem:[#allocation5 + $0x100c] ss:$12 sps:$4 sm:$0xff]  }
 0x18b   :  { %4452 = vmatpush1.bf16.msra.mxu0 %v6711_v20  ;;  %v6762_v20 = vld [vmem:[#allocation5 + $0x11b8] ss:$12 sps:$4 sm:$0xff]  }
 0x18c   :  { %4493 = vmatpush1.bf16.msra.mxu1 %v6714_v26  ;;  %4453 = vmatprep.subr.bf16.mxu0 %v6719_v29  ;;  %v6770_v27 = vld [vmem:[#allocation5 + $0x11a4] ss:$12 sps:$4 sm:$0xff]   ;;  %v6765_v26 = vld [vmem:[#allocation5 + $0x1020] ss:$12 sps:$4 sm:$0xff]  }
 0x18d   :  { %4494 = vmatprep.subr.bf16.mxu1 %v6722_v33  ;;  %v6768_v29 = vld [vmem:[#allocation5 + $0x11a0] ss:$12 sps:$4 sm:$0xff]   ;;  %v6771_v33 = vld [vmem:[#allocation5 + $0x1008] ss:$12 sps:$4 sm:$0xff]  }
 0x18e   :  { %v6776_v31 = vld [vmem:[#allocation5 + $0x118c] ss:$12 sps:$4 sm:$0xff]  }
 0x18f   :  { %4454 = vmatpush1.bf16.msra.mxu0 %v6717_v34  ;;  %v6774_v34 = vld [vmem:[#allocation5 + $0x1188] ss:$12 sps:$4 sm:$0xff]  }
 0x190   :  { %4495 = vmatpush1.bf16.msra.mxu1 %v6720_v32  ;;  %4455 = vmatprep.subr.bf16.mxu0 %v6725_v41  ;;  %v6779_v32 = vld [vmem:[#allocation5 + $0xff4] ss:$12 sps:$4 sm:$0xff]  }
 0x191   :  { %4496 = vmatprep.subr.bf16.mxu1 %v6728_v42  ;;  %v6782_v41 = vld [vmem:[#allocation5 + $0x1174] ss:$12 sps:$4 sm:$0xff]   ;;  %v6777_v42 = vld [vmem:[#allocation5 + $0xff0] ss:$12 sps:$4 sm:$0xff]  }
 0x193   :  { %4456 = vmatpush1.bf16.msra.mxu0 %v6723_v43  ;;  %v6780_v43 = vld [vmem:[#allocation5 + $0x1170] ss:$12 sps:$4 sm:$0xff]  }
 0x194   :  { %4497 = vmatpush1.bf16.msra.mxu1 %v6726_v23  ;;  %4457 = vmatprep.subr.bf16.mxu0 %v6731_v45  ;;  %v6785_v23 = vld [vmem:[#allocation5 + $0xfdc] ss:$12 sps:$4 sm:$0xff]  }
 0x195   :  { %4498 = vmatprep.subr.bf16.mxu1 %v6734_v46  ;;  %v6788_v45 = vld [vmem:[#allocation5 + $0x115c] ss:$12 sps:$4 sm:$0xff]   ;;  %v6783_v46 = vld [vmem:[#allocation5 + $0xfd8] ss:$12 sps:$4 sm:$0xff]  }
 0x197   :  { %4458 = vmatpush1.bf16.msra.mxu0 %v6729_v48  ;;  %v6786_v48 = vld [vmem:[#allocation5 + $0x1158] ss:$12 sps:$4 sm:$0xff]  }
 0x198   :  { %4499 = vmatpush1.bf16.msra.mxu1 %v6732_v49  ;;  %4459 = vmatprep.subr.bf16.mxu0 %v6737_v50  ;;  %v6791_v49 = vld [vmem:[#allocation5 + $0xfc4] ss:$12 sps:$4 sm:$0xff]  }
 0x199   :  { %4500 = vmatprep.subr.bf16.mxu1 %v6740_v52  ;;  %v6794_v50 = vld [vmem:[#allocation5 + $0x1144] ss:$12 sps:$4 sm:$0xff]   ;;  %v6789_v52 = vld [vmem:[#allocation5 + $0xfc0] ss:$12 sps:$4 sm:$0xff]  }
 0x19b   :  { %4460 = vmatpush1.bf16.msra.mxu0 %v6735_v53  ;;  %v6792_v53 = vld [vmem:[#allocation5 + $0x1140] ss:$12 sps:$4 sm:$0xff]  }
 0x19c   :  { %4501 = vmatpush1.bf16.msra.mxu1 %v6738_v55  ;;  %4461 = vmatprep.subr.bf16.mxu0 %v6743_v56  ;;  %v6799_v55 = vld [vmem:[#allocation5 + $0x170] ss:$12 sps:$4 sm:$0xff]  }
 0x19d   :  { %4502 = vmatprep.subr.bf16.mxu1 %v6746_v57  ;;  %v6800_v56 = vld [vmem:[#allocation5 + $0x2f0] ss:$12 sps:$4 sm:$0xff]  }
 0x19e   :  { %v6801_v57 = vld [vmem:[#allocation5 + $0xb0] ss:$12 sps:$4 sm:$0xff]  }
 0x19f   :  { %4462 = vmatpush1.bf16.msra.mxu0 %v6741_v58  ;;  %v7319_v58 = vcombine.low %v7287_v59, %v7287_v59  ;;  %v6806_v59 = vld [vmem:[#allocation5 + $0x218] ss:$12 sps:$4 sm:$0xff]  }
 0x1a0   :  { %4503 = vmatpush1.bf16.msra.mxu1 %v6744_v63  ;;  %4463 = vmatprep.subr.bf16.mxu0 %v6749_v4  ;;  %v7323_v63 = vcombine.low %v7297_v62, %v7297_v62  ;;  %v6802_v4 = vld [vmem:[#allocation5 + $0x230] ss:$12 sps:$4 sm:$0xff]   ;;  %v6807_v62 = vld [vmem:[#allocation5 + $0x140] ss:$12 sps:$4 sm:$0xff]  }
 0x1a1   :  { %4504 = vmatprep.subr.bf16.mxu1 %v6752_v5  ;;  %v6803_v5 = vld [vmem:[#allocation5 + $0x158] ss:$12 sps:$4 sm:$0xff]  }
 0x1a3   :  { %4464 = vmatpush2.bf16.msra.mxu0 %v6747_v9  ;;  %v6804_v9 = vld [vmem:[#allocation5 + $0x2d8] ss:$12 sps:$4 sm:$0xff]  }
 0x1a4   :  { %4505 = vmatpush2.bf16.msra.mxu1 %v6750_v3  ;;  %4465 = vmatprep.subr.bf16.mxu0 %v6755_v10  ;;  %v6805_v3 = vld [vmem:[#allocation5 + $0x98] ss:$12 sps:$4 sm:$0xff]  }
 0x1a5   :  { %4506 = vmatprep.subr.bf16.mxu1 %v6758_v11 }
 0x1a7   :  { %4466 = vmatpush2.bf16.msra.mxu0 %v6753_v12 }
 0x1a8   :  { %4507 = vmatpush2.bf16.msra.mxu1 %v6756_v13  ;;  %4467 = vmatprep.subr.bf16.mxu0 %v6761_v14 }
 0x1a9   :  { %4508 = vmatprep.subr.bf16.mxu1 %v6764_v15  ;;  %v6808_v15 = vld [vmem:[#allocation5 + $0x2c0] ss:$12 sps:$4 sm:$0xff]  }
 0x1ab   :  { %4468 = vmatpush2.bf16.msra.mxu0 %v6759_v19 }
 0x1ac   :  { %4509 = vmatpush2.bf16.msra.mxu1 %v6762_v20  ;;  %4469 = vmatprep.subr.bf16.mxu0 %v6767_v21  ;;  %v6809_v21 = vld [vmem:[#allocation5 + $0x80] ss:$12 sps:$4 sm:$0xff]  }
 0x1ad   :  { %4510 = vmatprep.subr.bf16.mxu1 %v6770_v27 }
 0x1af   :  { %4470 = vmatpush2.bf16.msra.mxu0 %v6765_v26 }
 0x1b0   :  { %4511 = vmatpush2.bf16.msra.mxu1 %v6768_v29  ;;  %4471 = vmatprep.subr.bf16.mxu0 %v6773_v30  ;;  %v6811_v30 = vld [vmem:[#allocation5 + $0x128] ss:$12 sps:$4 sm:$0xff]  }
 0x1b1   :  { %4512 = vmatprep.subr.bf16.mxu1 %v6776_v31 }
 0x1b3   :  { %4472 = vmatpush2.bf16.msra.mxu0 %v6771_v33 }
 0x1b4   :  { %4513 = vmatpush2.bf16.msra.mxu1 %v6774_v34  ;;  %4473 = vmatprep.subr.bf16.mxu0 %v6779_v32  ;;  %v6812_v34 = vld [vmem:[#allocation5 + $0x2a8] ss:$12 sps:$4 sm:$0xff]  }
 0x1b5   :  { %4514 = vmatprep.subr.bf16.mxu1 %v6782_v41  ;;  %v6813_v32 = vld [vmem:[#allocation5 + $0x68] ss:$12 sps:$4 sm:$0xff]   ;;  %v6817_v41 = vld [vmem:[#allocation5 + $0x50] ss:$12 sps:$4 sm:$0xff]  }
 0x1b7   :  { %4474 = vmatpush2.bf16.msra.mxu0 %v6777_v42  ;;  %v6818_v42 = vld [vmem:[#allocation5 + $0x1d0] ss:$12 sps:$4 sm:$0xff]  }
 0x1b8   :  { %4515 = vmatpush2.bf16.msra.mxu1 %v6780_v43  ;;  %4475 = vmatprep.subr.bf16.mxu0 %v6785_v23  ;;  %v6819_v43 = vld [vmem:[#allocation5 + $0xf8] ss:$12 sps:$4 sm:$0xff]  }
 0x1b9   :  { %4516 = vmatprep.subr.bf16.mxu1 %v6788_v45  ;;  %v6820_v23 = vld [vmem:[#allocation5 + $0x278] ss:$12 sps:$4 sm:$0xff]  }
 0x1ba   :  { %v6821_v45 = vld [vmem:[#allocation5 + $0x38] ss:$12 sps:$4 sm:$0xff]  }
 0x1bb   :  { %4476 = vmatpush2.bf16.msra.mxu0 %v6783_v46  ;;  %v6822_v46 = vld [vmem:[#allocation5 + $0x1b8] ss:$12 sps:$4 sm:$0xff]  }
 0x1bc   :  { %4517 = vmatpush2.bf16.msra.mxu1 %v6786_v48  ;;  %4477 = vmatprep.subr.bf16.mxu0 %v6791_v49  ;;  %v6823_v48 = vld [vmem:[#allocation5 + $0xe0] ss:$12 sps:$4 sm:$0xff]  }
 0x1bd   :  { %4518 = vmatprep.subr.bf16.mxu1 %v6794_v50  ;;  %v6824_v49 = vld [vmem:[#allocation5 + $0x260] ss:$12 sps:$4 sm:$0xff]  }
 0x1be   :  { %v6825_v50 = vld [vmem:[#allocation5 + $0x20] ss:$12 sps:$4 sm:$0xff]  }
 0x1bf   :  { %4478 = vmatpush2.bf16.msra.mxu0 %v6789_v52  ;;  %v6826_v52 = vld [vmem:[#allocation5 + $0x1a0] ss:$12 sps:$4 sm:$0xff]  }
 0x1c0   :  { %4519 = vmatpush2.bf16.msra.mxu1 %v6792_v53  ;;  %5836 = vmatprep.subr.bf16.mxu0 %v6799_v55  ;;  %v6827_v53 = vld [vmem:[#allocation5 + $0xc8] ss:$12 sps:$4 sm:$0xff]  }
 0x1c1   :  { %5858 = vmatprep.subr.bf16.mxu1 %v6800_v56  ;;  %v6828_v55 = vld [vmem:[#allocation5 + $0x248] ss:$12 sps:$4 sm:$0xff]  }
 0x1c2   :  { %v4235_v10 = vpop.f32.mrf.mxu0  ;;  %4480 = vmatmul.mubr.bf16.vlgmr.msra.gmra.mxu0 %v7319_v58  ;;  %v6829_v56 = vld [vmem:[#allocation5 + $0x8] ss:$12 sps:$4 sm:$0xff]  }
 0x1c3   :  { %v4276_v11 = vpop.f32.mrf.mxu1  ;;  %4521 = vmatmul.mubr.bf16.vlgmr.msra.gmra.mxu1 %v7323_v63  ;;  %v4236_v12 = vadd.f32 %v4235_v10, %v7310_v18  ;;  %5837 = vmatpush3.bf16.msra.mxu0 %v6801_v57  ;;  %v6810_v18 = vld [vmem:[#allocation5 + $0x200] ss:$12 sps:$4 sm:$0xff]   ;;  %v6830_v57 = vld [vmem:[#allocation5 + $0x188] ss:$12 sps:$4 sm:$0xff]   ;;  %v6835_v10 = vld [vmem:[#allocation5 + $0x458] ss:$12 sps:$4 sm:$0xff]  }
 0x1c4   :  { %5859 = vmatpush3.bf16.msra.mxu1 %v6802_v4  ;;  %v4237_v13 = vpop.f32.mrf.mxu0  ;;  %5838 = vmatprep.subr.bf16.mxu0 %v6803_v5  ;;  %v6831_v4 = vld [vmem:[#allocation5 + $0x470] ss:$12 sps:$4 sm:$0xff]  }
 0x1c5   :  { %v4278_v14 = vpop.f32.mrf.mxu1  ;;  %5860 = vmatprep.subr.bf16.mxu1 %v6804_v9  ;;  %v7328_v19 = vadd.f32 %v4276_v11, %v4236_v12  ;;  %v4238_v20 = vadd.f32 %v4237_v13, %v7315_v28  ;;  %4561 = vmatprep.mubr.bf16.mxu0 %v7181_v47  ;;  %v6814_v28 = vld [vmem:[#allocation5 + $0x1e8] ss:$12 sps:$4 sm:$0xff]   ;;  %v6815_v47 = vld [vmem:[#allocation5 + $0x110] ss:$12 sps:$4 sm:$0xff]   ;;  %v6836_v11 = vld [vmem:[#allocation5 + $0x5d8] ss:$12 sps:$4 sm:$0xff]  }
 0x1c6   :  { %4601 = vmatprep.mubr.bf16.mxu1 %v7183_v51  ;;  %v4239_v27 = vpop.f32.mrf.mxu0  ;;  %v6816_v51 = vld [vmem:[#allocation5 + $0x290] ss:$12 sps:$4 sm:$0xff]   ;;  %v6838_v12 = vld [vmem:[#allocation5 + $0x518] ss:$12 sps:$4 sm:$0xff]   ;;  %v6840_v13 = vld [vmem:[#allocation5 + $0x5c0] ss:$12 sps:$4 sm:$0xff]  }
 0x1c7   :  { %v4280_v26 = vpop.f32.mrf.mxu1  ;;  %v7333_v29 = vadd.f32 %v4278_v14, %v4238_v20  ;;  %5839 = vmatpush3.bf16.msra.mxu0 %v6805_v3  ;;  %v6832_v5 = vld [vmem:[#allocation5 + $0x5f0] ss:$12 sps:$4 sm:$0xff]   ;;  %v6841_v14 = vld [vmem:[#allocation5 + $0x380] ss:$12 sps:$4 sm:$0xff]   ;;  %v6843_v20 = vld [vmem:[#allocation5 + $0x428] ss:$12 sps:$4 sm:$0xff]  }
 0x1c8   :  { %5861 = vmatpush3.bf16.msra.mxu1 %v6806_v59  ;;  %v4240_v31 = vpop.f32.mrf.mxu0  ;;  %5840 = vmatprep.subr.bf16.mxu0 %v6807_v62  ;;  %v6833_v9 = vld [vmem:[#allocation5 + $0x3b0] ss:$12 sps:$4 sm:$0xff]   ;;  %v6837_v59 = vld [vmem:[#allocation5 + $0x398] ss:$12 sps:$4 sm:$0xff]   ;;  %v6839_v62 = vld [vmem:[#allocation5 + $0x440] ss:$12 sps:$4 sm:$0xff]  }
 0x1c9   :  { %v4281_v33 = vpop.f32.mrf.mxu1  ;;  %5862 = vmatprep.subr.bf16.mxu1 %v6808_v15  ;;  %v6834_v3 = vld [vmem:[#allocation5 + $0x530] ss:$12 sps:$4 sm:$0xff]   ;;  %v6842_v15 = vld [vmem:[#allocation5 + $0x500] ss:$12 sps:$4 sm:$0xff]   ;;  %v6853_v31 = vld [vmem:[#allocation5 + $0x338] ss:$12 sps:$4 sm:$0xff]  }
 0x1ca   :  { %v6847_v27 = vld [vmem:[#allocation5 + $0x410] ss:$12 sps:$4 sm:$0xff]   ;;  %v6854_v33 = vld [vmem:[#allocation5 + $0x4b8] ss:$12 sps:$4 sm:$0xff]  }
 0x1cb   :  { %5841 = vmatpush3.bf16.msra.mxu0 %v6809_v21  ;;  %v6846_v21 = vld [vmem:[#allocation5 + $0x4e8] ss:$12 sps:$4 sm:$0xff]   ;;  %v6848_v26 = vld [vmem:[#allocation5 + $0x590] ss:$12 sps:$4 sm:$0xff]  }
 0x1cc   :  { %5863 = vmatpush3.bf16.msra.mxu1 %v6810_v18  ;;  %5842 = vmatprep.subr.bf16.mxu0 %v6811_v30  ;;  %v6849_v18 = vld [vmem:[#allocation5 + $0x350] ss:$12 sps:$4 sm:$0xff]  }
 0x1cd   :  { %5864 = vmatprep.subr.bf16.mxu1 %v6812_v34  ;;  %v6850_v30 = vld [vmem:[#allocation5 + $0x4d0] ss:$12 sps:$4 sm:$0xff]   ;;  %v6855_v34 = vld [vmem:[#allocation5 + $0x3e0] ss:$12 sps:$4 sm:$0xff]  }
 0x1cf   :  { %5843 = vmatpush3.bf16.msra.mxu0 %v6813_v32  ;;  %v6856_v32 = vld [vmem:[#allocation5 + $0x560] ss:$12 sps:$4 sm:$0xff]  }
 0x1d0   :  { %5865 = vmatpush3.bf16.msra.mxu1 %v6814_v28  ;;  %5844 = vmatprep.subr.bf16.mxu0 %v6815_v47  ;;  %v6857_v28 = vld [vmem:[#allocation5 + $0x320] ss:$12 sps:$4 sm:$0xff]  }
 0x1d1   :  { %5866 = vmatprep.subr.bf16.mxu1 %v6816_v51  ;;  %v6858_v47 = vld [vmem:[#allocation5 + $0x4a0] ss:$12 sps:$4 sm:$0xff]   ;;  %v6859_v51 = vld [vmem:[#allocation5 + $0x3c8] ss:$12 sps:$4 sm:$0xff]  }
 0x1d3   :  { %5845 = vmatpush3.bf16.msra.mxu0 %v6817_v41  ;;  %v6860_v41 = vld [vmem:[#allocation5 + $0x548] ss:$12 sps:$4 sm:$0xff]  }
 0x1d4   :  { %5867 = vmatpush3.bf16.msra.mxu1 %v6818_v42  ;;  %5846 = vmatprep.subr.bf16.mxu0 %v6819_v43  ;;  %v6861_v42 = vld [vmem:[#allocation5 + $0x308] ss:$12 sps:$4 sm:$0xff]  }
 0x1d5   :  { %5868 = vmatprep.subr.bf16.mxu1 %v6820_v23  ;;  %v6862_v43 = vld [vmem:[#allocation5 + $0x488] ss:$12 sps:$4 sm:$0xff]   ;;  %v6863_v23 = vld [vmem:[#allocation5 + $0x770] ss:$12 sps:$4 sm:$0xff]  }
 0x1d7   :  { %5847 = vmatpush3.bf16.msra.mxu0 %v6821_v45  ;;  %v6864_v45 = vld [vmem:[#allocation5 + $0x8f0] ss:$12 sps:$4 sm:$0xff]  }
 0x1d8   :  { %5869 = vmatpush3.bf16.msra.mxu1 %v6822_v46  ;;  %5848 = vmatprep.subr.bf16.mxu0 %v6823_v48  ;;  %v6865_v46 = vld [vmem:[#allocation5 + $0x6b0] ss:$12 sps:$4 sm:$0xff]  }
 0x1d9   :  { %5870 = vmatprep.subr.bf16.mxu1 %v6824_v49  ;;  %v6866_v48 = vld [vmem:[#allocation5 + $0x830] ss:$12 sps:$4 sm:$0xff]   ;;  %v6867_v49 = vld [vmem:[#allocation5 + $0x758] ss:$12 sps:$4 sm:$0xff]  }
 0x1db   :  { %5849 = vmatpush3.bf16.msra.mxu0 %v6825_v50  ;;  %v6868_v50 = vld [vmem:[#allocation5 + $0x8d8] ss:$12 sps:$4 sm:$0xff]  }
 0x1dc   :  { %5871 = vmatpush3.bf16.msra.mxu1 %v6826_v52  ;;  %5850 = vmatprep.subr.bf16.mxu0 %v6827_v53 }
 0x1dd   :  { %5872 = vmatprep.subr.bf16.mxu1 %v6828_v55 }
 0x1df   :  { %5851 = vmatpush3.bf16.msra.mxu0 %v6829_v56  ;;  %v6869_v56 = vld [vmem:[#allocation5 + $0x698] ss:$12 sps:$4 sm:$0xff]  }
 0x1e0   :  { %5873 = vmatpush3.bf16.msra.mxu1 %v6830_v57  ;;  %5880 = vmatprep.subr.bf16.mxu0 %v6831_v4  ;;  %v6870_v57 = vld [vmem:[#allocation5 + $0x818] ss:$12 sps:$4 sm:$0xff]  }
 0x1e1   :  { %5902 = vmatprep.subr.bf16.mxu1 %v6832_v5 }
 0x1e2   :  { %4562 = vmatmul.mubr.bf16.vlgmr.msra.gmra.mxu0 %v7187_v6  ;;  %v6844_v6 = vld [vmem:[#allocation5 + $0x5a8] ss:$12 sps:$4 sm:$0xff]  }
 0x1e3   :  { %4602 = vmatmul.mubr.bf16.vlgmr.msra.gmra.mxu1 %v7189_v7  ;;  %5881 = vmatpush3.bf16.msra.mxu0 %v6833_v9  ;;  %v6845_v7 = vld [vmem:[#allocation5 + $0x368] ss:$12 sps:$4 sm:$0xff]   ;;  %v6871_v9 = vld [vmem:[#allocation5 + $0x740] ss:$12 sps:$4 sm:$0xff]  }
 0x1e4   :  { %5903 = vmatpush3.bf16.msra.mxu1 %v6834_v3  ;;  %5882 = vmatprep.subr.bf16.mxu0 %v6835_v10  ;;  %v6872_v3 = vld [vmem:[#allocation5 + $0x8c0] ss:$12 sps:$4 sm:$0xff]  }
 0x1e5   :  { %5904 = vmatprep.subr.bf16.mxu1 %v6836_v11  ;;  %4641 = vmatprep.mubr.bf16.mxu0 %v7199_v36  ;;  %v6851_v36 = vld [vmem:[#allocation5 + $0x3f8] ss:$12 sps:$4 sm:$0xff]  }
 0x1e6   :  { %4681 = vmatprep.mubr.bf16.mxu1 %v7203_v37  ;;  %v6852_v37 = vld [vmem:[#allocation5 + $0x578] ss:$12 sps:$4 sm:$0xff]  }
 0x1e7   :  { %5883 = vmatpush3.bf16.msra.mxu0 %v6837_v59  ;;  %v6873_v59 = vld [vmem:[#allocation5 + $0x680] ss:$12 sps:$4 sm:$0xff]  }
 0x1e8   :  { %5905 = vmatpush3.bf16.msra.mxu1 %v6838_v12  ;;  %5884 = vmatprep.subr.bf16.mxu0 %v6839_v62  ;;  %v6874_v12 = vld [vmem:[#allocation5 + $0x800] ss:$12 sps:$4 sm:$0xff]  }
 0x1e9   :  { %5906 = vmatprep.subr.bf16.mxu1 %v6840_v13 }
 0x1eb   :  { %5885 = vmatpush3.bf16.msra.mxu0 %v6841_v14  ;;  %v6875_v14 = vld [vmem:[#allocation5 + $0x728] ss:$12 sps:$4 sm:$0xff]  }
 0x1ec   :  { %5907 = vmatpush3.bf16.msra.mxu1 %v6842_v15  ;;  %5886 = vmatprep.subr.bf16.mxu0 %v6843_v20  ;;  %v6876_v15 = vld [vmem:[#allocation5 + $0x8a8] ss:$12 sps:$4 sm:$0xff]   ;;  %v6880_v20 = vld [vmem:[#allocation5 + $0x890] ss:$12 sps:$4 sm:$0xff]  }
 0x1ed   :  { %5908 = vmatprep.subr.bf16.mxu1 %v6844_v6  ;;  %v6881_v6 = vld [vmem:[#allocation5 + $0x650] ss:$12 sps:$4 sm:$0xff]  }
 0x1ef   :  { %5887 = vmatpush3.bf16.msra.mxu0 %v6845_v7  ;;  %v6882_v7 = vld [vmem:[#allocation5 + $0x7d0] ss:$12 sps:$4 sm:$0xff]  }
 0x1f0   :  { %5909 = vmatpush3.bf16.msra.mxu1 %v6846_v21  ;;  %5888 = vmatprep.subr.bf16.mxu0 %v6847_v27  ;;  %v6883_v21 = vld [vmem:[#allocation5 + $0x6f8] ss:$12 sps:$4 sm:$0xff]  }
 0x1f1   :  { %5910 = vmatprep.subr.bf16.mxu1 %v6848_v26  ;;  %v6884_v27 = vld [vmem:[#allocation5 + $0x878] ss:$12 sps:$4 sm:$0xff]  }
 0x1f2   :  { %v6885_v26 = vld [vmem:[#allocation5 + $0x638] ss:$12 sps:$4 sm:$0xff]  }
 0x1f3   :  { %5889 = vmatpush3.bf16.msra.mxu0 %v6849_v18  ;;  %v6886_v18 = vld [vmem:[#allocation5 + $0x7b8] ss:$12 sps:$4 sm:$0xff]  }
 0x1f4   :  { %5911 = vmatpush3.bf16.msra.mxu1 %v6850_v30  ;;  %5890 = vmatprep.subr.bf16.mxu0 %v6851_v36  ;;  %v6887_v30 = vld [vmem:[#allocation5 + $0x6e0] ss:$12 sps:$4 sm:$0xff]  }
 0x1f5   :  { %5912 = vmatprep.subr.bf16.mxu1 %v6852_v37  ;;  %v6888_v36 = vld [vmem:[#allocation5 + $0x860] ss:$12 sps:$4 sm:$0xff]  }
 0x1f6   :  { %v6889_v37 = vld [vmem:[#allocation5 + $0x620] ss:$12 sps:$4 sm:$0xff]  }
 0x1f7   :  { %5891 = vmatpush3.bf16.msra.mxu0 %v6853_v31  ;;  %v6890_v31 = vld [vmem:[#allocation5 + $0x7a0] ss:$12 sps:$4 sm:$0xff]  }
 0x1f8   :  { %5913 = vmatpush3.bf16.msra.mxu1 %v6854_v33  ;;  %5892 = vmatprep.subr.bf16.mxu0 %v6855_v34  ;;  %v6891_v33 = vld [vmem:[#allocation5 + $0x6c8] ss:$12 sps:$4 sm:$0xff]  }
 0x1f9   :  { %5914 = vmatprep.subr.bf16.mxu1 %v6856_v32  ;;  %v6892_v34 = vld [vmem:[#allocation5 + $0x848] ss:$12 sps:$4 sm:$0xff]  }
 0x1fa   :  { %v6893_v32 = vld [vmem:[#allocation5 + $0x608] ss:$12 sps:$4 sm:$0xff]  }
 0x1fb   :  { %5893 = vmatpush3.bf16.msra.mxu0 %v6857_v28  ;;  %v6894_v28 = vld [vmem:[#allocation5 + $0x788] ss:$12 sps:$4 sm:$0xff]  }
 0x1fc   :  { %5915 = vmatpush3.bf16.msra.mxu1 %v6858_v47  ;;  %5894 = vmatprep.subr.bf16.mxu0 %v6859_v51  ;;  %v6895_v47 = vld [vmem:[#allocation5 + $0xa70] ss:$12 sps:$4 sm:$0xff]  }
 0x1fd   :  { %5916 = vmatprep.subr.bf16.mxu1 %v6860_v41  ;;  %v6896_v51 = vld [vmem:[#allocation5 + $0xbf0] ss:$12 sps:$4 sm:$0xff]  }
 0x1fe   :  { %v6897_v41 = vld [vmem:[#allocation5 + $0x9b0] ss:$12 sps:$4 sm:$0xff]  }
 0x1ff   :  { %5895 = vmatpush3.bf16.msra.mxu0 %v6861_v42  ;;  %v6898_v42 = vld [vmem:[#allocation5 + $0xb30] ss:$12 sps:$4 sm:$0xff]  }
 0x200   :  { %5917 = vmatpush3.bf16.msra.mxu1 %v6862_v43  ;;  %5924 = vmatprep.subr.bf16.mxu0 %v6863_v23  ;;  %v6899_v43 = vld [vmem:[#allocation5 + $0xa58] ss:$12 sps:$4 sm:$0xff]  }
 0x201   :  { %5946 = vmatprep.subr.bf16.mxu1 %v6864_v45  ;;  %v6900_v23 = vld [vmem:[#allocation5 + $0xbd8] ss:$12 sps:$4 sm:$0xff]  }
 0x202   :  { %v4317_v52 = vpop.f32.mrf.mxu0  ;;  %4642 = vmatmul.mubr.bf16.vlgmr.msra.gmra.mxu0 %v7209_v16  ;;  %v6901_v45 = vld [vmem:[#allocation5 + $0x998] ss:$12 sps:$4 sm:$0xff]  }
 0x203   :  { %v4358_v53 = vpop.f32.mrf.mxu1  ;;  %4682 = vmatmul.mubr.bf16.vlgmr.msra.gmra.mxu1 %v7213_v17  ;;  %v4318_v55 = vadd.f32 %v4317_v52, %v7328_v19  ;;  %5925 = vmatpush3.bf16.msra.mxu0 %v6865_v46  ;;  %v6902_v46 = vld [vmem:[#allocation5 + $0xb18] ss:$12 sps:$4 sm:$0xff]   ;;  %v6906_v52 = vld [vmem:[#allocation5 + $0xb00] ss:$12 sps:$4 sm:$0xff]  }
 0x204   :  { %5947 = vmatpush3.bf16.msra.mxu1 %v6866_v48  ;;  %v4319_v4 = vpop.f32.mrf.mxu0  ;;  %5926 = vmatprep.subr.bf16.mxu0 %v6867_v49  ;;  %v6903_v48 = vld [vmem:[#allocation5 + $0xa40] ss:$12 sps:$4 sm:$0xff]  }
 0x205   :  { %v4360_v5 = vpop.f32.mrf.mxu1  ;;  %5948 = vmatprep.subr.bf16.mxu1 %v6868_v50  ;;  %v7342_v10 = vadd.f32 %v4358_v53, %v4318_v55  ;;  %v4320_v11 = vadd.f32 %v4319_v4, %v7333_v29  ;;  %4721 = vmatprep.mubr.bf16.mxu0 %v7221_v24  ;;  %v6877_v29 = vld [vmem:[#allocation5 + $0x668] ss:$12 sps:$4 sm:$0xff]   ;;  %v6904_v49 = vld [vmem:[#allocation5 + $0xbc0] ss:$12 sps:$4 sm:$0xff]   ;;  %v6915_v4 = vld [vmem:[#allocation5 + $0x9f8] ss:$12 sps:$4 sm:$0xff]  }
 0x206   :  { %4761 = vmatprep.mubr.bf16.mxu1 %v7225_v25  ;;  %v4321_v16 = vpop.f32.mrf.mxu0  ;;  %v6878_v24 = vld [vmem:[#allocation5 + $0x7e8] ss:$12 sps:$4 sm:$0xff]   ;;  %v6879_v25 = vld [vmem:[#allocation5 + $0x710] ss:$12 sps:$4 sm:$0xff]   ;;  %v6905_v50 = vld [vmem:[#allocation5 + $0x980] ss:$12 sps:$4 sm:$0xff]  }
 0x207   :  { %v4362_v17 = vpop.f32.mrf.mxu1  ;;  %v7347_v19 = vadd.f32 %v4360_v5, %v4320_v11  ;;  %5927 = vmatpush3.bf16.msra.mxu0 %v6869_v56  ;;  %v6909_v53 = vld [vmem:[#allocation5 + $0x968] ss:$12 sps:$4 sm:$0xff]   ;;  %v6911_v56 = vld [vmem:[#allocation5 + $0xa10] ss:$12 sps:$4 sm:$0xff]   ;;  %v6916_v5 = vld [vmem:[#allocation5 + $0xb78] ss:$12 sps:$4 sm:$0xff]  }
 0x208   :  { %5949 = vmatpush3.bf16.msra.mxu1 %v6870_v57  ;;  %v4322_v62 = vpop.f32.mrf.mxu0  ;;  %5928 = vmatprep.subr.bf16.mxu0 %v6871_v9  ;;  %v6910_v55 = vld [vmem:[#allocation5 + $0xae8] ss:$12 sps:$4 sm:$0xff]   ;;  %v6912_v57 = vld [vmem:[#allocation5 + $0xb90] ss:$12 sps:$4 sm:$0xff]   ;;  %v6917_v9 = vld [vmem:[#allocation5 + $0x938] ss:$12 sps:$4 sm:$0xff]  }
 0x209   :  { %v4363_v13 = vpop.f32.mrf.mxu1  ;;  %5950 = vmatprep.subr.bf16.mxu1 %v6872_v3  ;;  %v6918_v3 = vld [vmem:[#allocation5 + $0xab8] ss:$12 sps:$4 sm:$0xff]   ;;  %v6919_v11 = vld [vmem:[#allocation5 + $0x9e0] ss:$12 sps:$4 sm:$0xff]   ;;  %v6924_v62 = vld [vmem:[#allocation5 + $0xb48] ss:$12 sps:$4 sm:$0xff]  }
 0x20a   :  { %v6920_v16 = vld [vmem:[#allocation5 + $0xb60] ss:$12 sps:$4 sm:$0xff]   ;;  %v6925_v13 = vld [vmem:[#allocation5 + $0x908] ss:$12 sps:$4 sm:$0xff]  }
 0x20b   :  { %5929 = vmatpush3.bf16.msra.mxu0 %v6873_v59  ;;  %v6921_v17 = vld [vmem:[#allocation5 + $0x920] ss:$12 sps:$4 sm:$0xff]  }
 0x20c   :  { %5951 = vmatpush3.bf16.msra.mxu1 %v6874_v12  ;;  %5930 = vmatprep.subr.bf16.mxu0 %v6875_v14  ;;  %v6922_v59 = vld [vmem:[#allocation5 + $0xaa0] ss:$12 sps:$4 sm:$0xff]   ;;  %v6923_v12 = vld [vmem:[#allocation5 + $0x9c8] ss:$12 sps:$4 sm:$0xff]  }
 0x20d   :  { %5952 = vmatprep.subr.bf16.mxu1 %v6876_v15  ;;  %v6926_v14 = vld [vmem:[#allocation5 + $0xa88] ss:$12 sps:$4 sm:$0xff]   ;;  %v6927_v15 = vld [vmem:[#allocation5 + $0xd70] ss:$12 sps:$4 sm:$0xff]  }
 0x20f   :  { %5931 = vmatpush3.bf16.msra.mxu0 %v6877_v29  ;;  %v6928_v29 = vld [vmem:[#allocation5 + $0xef0] ss:$12 sps:$4 sm:$0xff]  }
 0x210   :  { %5953 = vmatpush3.bf16.msra.mxu1 %v6878_v24  ;;  %5932 = vmatprep.subr.bf16.mxu0 %v6879_v25  ;;  %v6929_v24 = vld [vmem:[#allocation5 + $0xcb0] ss:$12 sps:$4 sm:$0xff]  }
 0x211   :  { %5954 = vmatprep.subr.bf16.mxu1 %v6880_v20  ;;  %v6930_v25 = vld [vmem:[#allocation5 + $0xe30] ss:$12 sps:$4 sm:$0xff]   ;;  %v6931_v20 = vld [vmem:[#allocation5 + $0xd58] ss:$12 sps:$4 sm:$0xff]  }
 0x213   :  { %5933 = vmatpush3.bf16.msra.mxu0 %v6881_v6  ;;  %v6932_v6 = vld [vmem:[#allocation5 + $0xed8] ss:$12 sps:$4 sm:$0xff]  }
 0x214   :  { %5955 = vmatpush3.bf16.msra.mxu1 %v6882_v7  ;;  %5934 = vmatprep.subr.bf16.mxu0 %v6883_v21 }
 0x215   :  { %5956 = vmatprep.subr.bf16.mxu1 %v6884_v27 }
 0x217   :  { %5935 = vmatpush3.bf16.msra.mxu0 %v6885_v26  ;;  %v6933_v26 = vld [vmem:[#allocation5 + $0xc98] ss:$12 sps:$4 sm:$0xff]  }
 0x218   :  { %5957 = vmatpush3.bf16.msra.mxu1 %v6886_v18  ;;  %5936 = vmatprep.subr.bf16.mxu0 %v6887_v30  ;;  %v6934_v18 = vld [vmem:[#allocation5 + $0xe18] ss:$12 sps:$4 sm:$0xff]  }
 0x219   :  { %5958 = vmatprep.subr.bf16.mxu1 %v6888_v36 }
 0x21b   :  { %5937 = vmatpush3.bf16.msra.mxu0 %v6889_v37  ;;  %v6935_v37 = vld [vmem:[#allocation5 + $0xd40] ss:$12 sps:$4 sm:$0xff]  }
 0x21c   :  { %5959 = vmatpush3.bf16.msra.mxu1 %v6890_v31  ;;  %5938 = vmatprep.subr.bf16.mxu0 %v6891_v33  ;;  %v6936_v31 = vld [vmem:[#allocation5 + $0xec0] ss:$12 sps:$4 sm:$0xff]  }
 0x21d   :  { %5960 = vmatprep.subr.bf16.mxu1 %v6892_v34  ;;  %v6938_v34 = vld [vmem:[#allocation5 + $0xe00] ss:$12 sps:$4 sm:$0xff]  }
 0x21f   :  { %5939 = vmatpush3.bf16.msra.mxu0 %v6893_v32 }
 0x220   :  { %5961 = vmatpush3.bf16.msra.mxu1 %v6894_v28  ;;  %5968 = vmatprep.subr.bf16.mxu0 %v6895_v47  ;;  %v6939_v47 = vld [vmem:[#allocation5 + $0xd28] ss:$12 sps:$4 sm:$0xff]  }
 0x221   :  { %5990 = vmatprep.subr.bf16.mxu1 %v6896_v51  ;;  %v6940_v51 = vld [vmem:[#allocation5 + $0xea8] ss:$12 sps:$4 sm:$0xff]  }
 0x222   :  { %4722 = vmatmul.mubr.bf16.vlgmr.msra.gmra.mxu0 %v7235_v38  ;;  %v6907_v38 = vld [vmem:[#allocation5 + $0xa28] ss:$12 sps:$4 sm:$0xff]  }
 0x223   :  { %4762 = vmatmul.mubr.bf16.vlgmr.msra.gmra.mxu1 %v7239_v39  ;;  %5969 = vmatpush3.bf16.msra.mxu0 %v6897_v41  ;;  %v6908_v39 = vld [vmem:[#allocation5 + $0xba8] ss:$12 sps:$4 sm:$0xff]  }
 0x224   :  { %5991 = vmatpush3.bf16.msra.mxu1 %v6898_v42  ;;  %5970 = vmatprep.subr.bf16.mxu0 %v6899_v43  ;;  %v6941_v41 = vld [vmem:[#allocation5 + $0xc68] ss:$12 sps:$4 sm:$0xff]   ;;  %v6945_v43 = vld [vmem:[#allocation5 + $0xc50] ss:$12 sps:$4 sm:$0xff]  }
 0x225   :  { %5992 = vmatprep.subr.bf16.mxu1 %v6900_v23  ;;  %4801 = vmatprep.mubr.bf16.mxu0 %v7245_v44  ;;  %v6913_v44 = vld [vmem:[#allocation5 + $0x950] ss:$12 sps:$4 sm:$0xff]   ;;  %v6942_v42 = vld [vmem:[#allocation5 + $0xde8] ss:$12 sps:$4 sm:$0xff]  }
 0x226   :  { %4841 = vmatprep.mubr.bf16.mxu1 %v7249_v22  ;;  %v6914_v22 = vld [vmem:[#allocation5 + $0xad0] ss:$12 sps:$4 sm:$0xff]  }
 0x227   :  { %5971 = vmatpush3.bf16.msra.mxu0 %v6901_v45  ;;  %v6946_v23 = vld [vmem:[#allocation5 + $0xdd0] ss:$12 sps:$4 sm:$0xff]   ;;  %v6947_v45 = vld [vmem:[#allocation5 + $0xcf8] ss:$12 sps:$4 sm:$0xff]  }
 0x228   :  { %5993 = vmatpush3.bf16.msra.mxu1 %v6902_v46  ;;  %5972 = vmatprep.subr.bf16.mxu0 %v6903_v48  ;;  %v6948_v46 = vld [vmem:[#allocation5 + $0xe78] ss:$12 sps:$4 sm:$0xff]  }
 0x229   :  { %5994 = vmatprep.subr.bf16.mxu1 %v6904_v49  ;;  %v6949_v48 = vld [vmem:[#allocation5 + $0xc38] ss:$12 sps:$4 sm:$0xff]  }
 0x22a   :  { %v6950_v49 = vld [vmem:[#allocation5 + $0xdb8] ss:$12 sps:$4 sm:$0xff]  }
 0x22b   :  { %5973 = vmatpush3.bf16.msra.mxu0 %v6905_v50  ;;  %v6951_v50 = vld [vmem:[#allocation5 + $0xce0] ss:$12 sps:$4 sm:$0xff]  }
 0x22c   :  { %5995 = vmatpush3.bf16.msra.mxu1 %v6906_v52  ;;  %5974 = vmatprep.subr.bf16.mxu0 %v6907_v38  ;;  %v6952_v52 = vld [vmem:[#allocation5 + $0xe60] ss:$12 sps:$4 sm:$0xff]  }
 0x22d   :  { %5996 = vmatprep.subr.bf16.mxu1 %v6908_v39  ;;  %v6953_v38 = vld [vmem:[#allocation5 + $0xc20] ss:$12 sps:$4 sm:$0xff]  }
 0x22e   :  { %v6954_v39 = vld [vmem:[#allocation5 + $0xda0] ss:$12 sps:$4 sm:$0xff]  }
 0x22f   :  { %5975 = vmatpush3.bf16.msra.mxu0 %v6909_v53  ;;  %v6955_v53 = vld [vmem:[#allocation5 + $0xcc8] ss:$12 sps:$4 sm:$0xff]  }
 0x230   :  { %5997 = vmatpush3.bf16.msra.mxu1 %v6910_v55  ;;  %5976 = vmatprep.subr.bf16.mxu0 %v6911_v56  ;;  %v6956_v55 = vld [vmem:[#allocation5 + $0xe48] ss:$12 sps:$4 sm:$0xff]  }
 0x231   :  { %5998 = vmatprep.subr.bf16.mxu1 %v6912_v57  ;;  %v6957_v56 = vld [vmem:[#allocation5 + $0xc08] ss:$12 sps:$4 sm:$0xff]  }
 0x232   :  { %v6958_v57 = vld [vmem:[#allocation5 + $0xd88] ss:$12 sps:$4 sm:$0xff]  }
 0x233   :  { %5977 = vmatpush3.bf16.msra.mxu0 %v6913_v44  ;;  %v6959_v44 = vld [vmem:[#allocation5 + $0x1070] ss:$12 sps:$4 sm:$0xff]  }
 0x234   :  { %5999 = vmatpush3.bf16.msra.mxu1 %v6914_v22  ;;  %5978 = vmatprep.subr.bf16.mxu0 %v6915_v4  ;;  %v6960_v22 = vld [vmem:[#allocation5 + $0x11f0] ss:$12 sps:$4 sm:$0xff]  }
 0x235   :  { %6000 = vmatprep.subr.bf16.mxu1 %v6916_v5  ;;  %v6961_v4 = vld [vmem:[#allocation5 + $0xfb0] ss:$12 sps:$4 sm:$0xff]  }
 0x236   :  { %v6962_v5 = vld [vmem:[#allocation5 + $0x1130] ss:$12 sps:$4 sm:$0xff]  }
 0x237   :  { %5979 = vmatpush3.bf16.msra.mxu0 %v6917_v9  ;;  %v6963_v9 = vld [vmem:[#allocation5 + $0x1058] ss:$12 sps:$4 sm:$0xff]  }
 0x238   :  { %6001 = vmatpush3.bf16.msra.mxu1 %v6918_v3  ;;  %5980 = vmatprep.subr.bf16.mxu0 %v6919_v11  ;;  %v6964_v3 = vld [vmem:[#allocation5 + $0x11d8] ss:$12 sps:$4 sm:$0xff]  }
 0x239   :  { %6002 = vmatprep.subr.bf16.mxu1 %v6920_v16  ;;  %v6965_v11 = vld [vmem:[#allocation5 + $0xf98] ss:$12 sps:$4 sm:$0xff]  }
 0x23a   :  { %v6966_v16 = vld [vmem:[#allocation5 + $0x1118] ss:$12 sps:$4 sm:$0xff]  }
 0x23b   :  { %5981 = vmatpush3.bf16.msra.mxu0 %v6921_v17  ;;  %v6967_v17 = vld [vmem:[#allocation5 + $0x1040] ss:$12 sps:$4 sm:$0xff]  }
 0x23c   :  { %6003 = vmatpush3.bf16.msra.mxu1 %v6922_v59  ;;  %5982 = vmatprep.subr.bf16.mxu0 %v6923_v12  ;;  %v6968_v59 = vld [vmem:[#allocation5 + $0x11c0] ss:$12 sps:$4 sm:$0xff]  }
 0x23d   :  { %6004 = vmatprep.subr.bf16.mxu1 %v6924_v62  ;;  %v6969_v12 = vld [vmem:[#allocation5 + $0xf80] ss:$12 sps:$4 sm:$0xff]  }
 0x23e   :  { %v6970_v62 = vld [vmem:[#allocation5 + $0x1100] ss:$12 sps:$4 sm:$0xff]  }
 0x23f   :  { %5983 = vmatpush3.bf16.msra.mxu0 %v6925_v13  ;;  %v6973_v13 = vld [vmem:[#allocation5 + $0xf68] ss:$12 sps:$4 sm:$0xff]  }
 0x240   :  { %6005 = vmatpush3.bf16.msra.mxu1 %v6926_v14  ;;  %6012 = vmatprep.subr.bf16.mxu0 %v6927_v15  ;;  %v6974_v14 = vld [vmem:[#allocation5 + $0x10e8] ss:$12 sps:$4 sm:$0xff]   ;;  %v6975_v15 = vld [vmem:[#allocation5 + $0x1010] ss:$12 sps:$4 sm:$0xff]  }
 0x241   :  { %6034 = vmatprep.subr.bf16.mxu1 %v6928_v29  ;;  %v6976_v29 = vld [vmem:[#allocation5 + $0x1190] ss:$12 sps:$4 sm:$0xff]  }
 0x242   :  { %v4399_v7 = vpop.f32.mrf.mxu0  ;;  %4802 = vmatmul.mubr.bf16.vlgmr.msra.gmra.mxu0 %v7261_v0 }
 0x243   :  { %v4440_v21 = vpop.f32.mrf.mxu1  ;;  %4842 = vmatmul.mubr.bf16.vlgmr.msra.gmra.mxu1 %v7265_v1  ;;  %v4400_v27 = vadd.f32 %v4399_v7, %v7342_v10  ;;  %6013 = vmatpush3.bf16.msra.mxu0 %v6929_v24  ;;  %v6937_v10 = vld [vmem:[#allocation5 + $0xc80] ss:$12 sps:$4 sm:$0xff]   ;;  %v6979_v24 = vld [vmem:[#allocation5 + $0xff8] ss:$12 sps:$4 sm:$0xff]  }
 0x244   :  { %6035 = vmatpush3.bf16.msra.mxu1 %v6930_v25  ;;  %v7356_v30 = vpop.f32.mrf.mxu0  ;;  %6014 = vmatprep.subr.bf16.mxu0 %v6931_v20  ;;  %v6980_v25 = vld [vmem:[#allocation5 + $0x1178] ss:$12 sps:$4 sm:$0xff]   ;;  %v6983_v7 = vld [vmem:[#allocation5 + $0xfe0] ss:$12 sps:$4 sm:$0xff]  }
 0x245   :  { %v7358_v36 = vpop.f32.mrf.mxu1  ;;  %6036 = vmatprep.subr.bf16.mxu1 %v6932_v6  ;;  %v7360_v33 = vadd.f32 %v4440_v21, %v4400_v27  ;;  %4881 = vmatprep.mubr.bf16.mxu0 %v7273_v35  ;;  %v6943_v35 = vld [vmem:[#allocation5 + $0xd10] ss:$12 sps:$4 sm:$0xff]   ;;  %v6981_v20 = vld [vmem:[#allocation5 + $0xf38] ss:$12 sps:$4 sm:$0xff]   ;;  %v6984_v21 = vld [vmem:[#allocation5 + $0x1160] ss:$12 sps:$4 sm:$0xff]  }
 0x246   :  { %4921 = vmatprep.mubr.bf16.mxu1 %v7277_v40  ;;  %v4403_v0 = vpop.f32.mrf.mxu0  ;;  %v6944_v40 = vld [vmem:[#allocation5 + $0xe90] ss:$12 sps:$4 sm:$0xff]   ;;  %v6982_v6 = vld [vmem:[#allocation5 + $0x10b8] ss:$12 sps:$4 sm:$0xff]   ;;  %v6985_v27 = vld [vmem:[#allocation5 + $0xf20] ss:$12 sps:$4 sm:$0xff]  }
 0x247   :  { %v4444_v1 = vpop.f32.mrf.mxu1  ;;  %6015 = vmatpush3.bf16.msra.mxu0 %v6933_v26  ;;  %v6986_v26 = vld [vmem:[#allocation5 + $0x10a0] ss:$12 sps:$4 sm:$0xff]   ;;  %v6990_v0 = vld [vmem:[#allocation5 + $0x1088] ss:$12 sps:$4 sm:$0xff]  }
 0x248   :  { %6037 = vmatpush3.bf16.msra.mxu1 %v6934_v18  ;;  %v4404_v32 = vpop.f32.mrf.mxu0  ;;  %6016 = vmatprep.subr.bf16.mxu0 %v6935_v37  ;;  %v6987_v18 = vld [vmem:[#allocation5 + $0xfc8] ss:$12 sps:$4 sm:$0xff]   ;;  %v5043_v1 = vld [vmem:[#allocation8 + $0xf8] sm:$0xff] }
 0x249   :  { %v4445_v28 = vpop.f32.mrf.mxu1  ;;  %6038 = vmatprep.subr.bf16.mxu1 %v6936_v31  ;;  %v6988_v37 = vld [vmem:[#allocation5 + $0x1148] ss:$12 sps:$4 sm:$0xff]  }
 0x24a   :  { %v6989_v31 = vld [vmem:[#allocation5 + $0xf08] ss:$12 sps:$4 sm:$0xff]  }
 0x24b   :  { %6017 = vmatpush3.bf16.msra.mxu0 %v6937_v10  ;;  %v4402_v10 = vadd.f32 %v7356_v30, %v7347_v19  ;;  %v5042_v32 = vld [vmem:[#allocation8 + $0xf0] sm:$0xff]  ;;  %v5025_v19 = vld [vmem:[#allocation8 + $0x68] sm:$0xff] }
 0x24c   :  { %6039 = vmatpush3.bf16.msra.mxu1 %v6938_v34  ;;  %6018 = vmatprep.subr.bf16.mxu0 %v6939_v47  ;;  %v5027_v34 = vld [vmem:[#allocation8 + $0x78] sm:$0xff] }
 0x24d   :  { %6040 = vmatprep.subr.bf16.mxu1 %v6940_v51  ;;  %v5026_v51 = vld [vmem:[#allocation8 + $0x70] sm:$0xff] }
 0x24f   :  { %6019 = vmatpush3.bf16.msra.mxu0 %v6941_v41  ;;  %v4443_v41 = vadd.f32 %v7358_v36, %v4402_v10  ;;  %v5023_v36 = vld [vmem:[#allocation8 + $0x58] sm:$0xff]  ;;  %v5058_v10 = vld [vmem:[#allocation8 + $0x170] sm:$0xff] }
 0x250   :  { %6041 = vmatpush3.bf16.msra.mxu1 %v6942_v42  ;;  %6020 = vmatprep.subr.bf16.mxu0 %v6943_v35  ;;  %v5041_v42 = vld [vmem:[#allocation8 + $0xe8] sm:$0xff] }
 0x251   :  { %6042 = vmatprep.subr.bf16.mxu1 %v6944_v40 }
 0x253   :  { %6021 = vmatpush3.bf16.msra.mxu0 %v6945_v43  ;;  %v5040_v43 = vld [vmem:[#allocation8 + $0xe0] sm:$0xff] }
 0x254   :  { %6043 = vmatpush3.bf16.msra.mxu1 %v6946_v23  ;;  %6022 = vmatprep.subr.bf16.mxu0 %v6947_v45 }
 0x255   :  { %6044 = vmatprep.subr.bf16.mxu1 %v6948_v46  ;;  %v5024_v46 = vld [vmem:[#allocation8 + $0x60] sm:$0xff] }
 0x257   :  { %6023 = vmatpush3.bf16.msra.mxu0 %v6949_v48 }
 0x258   :  { %6045 = vmatpush3.bf16.msra.mxu1 %v6950_v49  ;;  %6024 = vmatprep.subr.bf16.mxu0 %v6951_v50 }
 0x259   :  { %6046 = vmatprep.subr.bf16.mxu1 %v6952_v52  ;;  %v5038_v52 = vld [vmem:[#allocation8 + $0xd0] sm:$0xff] }
 0x25b   :  { %6025 = vmatpush3.bf16.msra.mxu0 %v6953_v38  ;;  %v5022_v38 = vld [vmem:[#allocation8 + $0x50] sm:$0xff] }
 0x25c   :  { %6047 = vmatpush3.bf16.msra.mxu1 %v6954_v39  ;;  %6026 = vmatprep.subr.bf16.mxu0 %v6955_v53  ;;  %v5037_v39 = vld [vmem:[#allocation8 + $0xc8] sm:$0xff] }
 0x25d   :  { %6048 = vmatprep.subr.bf16.mxu1 %v6956_v55  ;;  %v5021_v53 = vld [vmem:[#allocation8 + $0x48] sm:$0xff]  ;;  %v5036_v55 = vld [vmem:[#allocation8 + $0xc0] sm:$0xff] }
 0x25f   :  { %6027 = vmatpush3.bf16.msra.mxu0 %v6957_v56  ;;  %v5020_v56 = vld [vmem:[#allocation8 + $0x40] sm:$0xff] }
 0x260   :  { %6049 = vmatpush3.bf16.msra.mxu1 %v6958_v57  ;;  %6056 = vmatprep.subr.bf16.mxu0 %v6959_v44  ;;  %v5035_v57 = vld [vmem:[#allocation8 + $0xb8] sm:$0xff] }
 0x261   :  { %6078 = vmatprep.subr.bf16.mxu1 %v6960_v22  ;;  %v5019_v44 = vld [vmem:[#allocation8 + $0x38] sm:$0xff]  ;;  %v5034_v22 = vld [vmem:[#allocation8 + $0xb0] sm:$0xff] }
 0x262   :  { %4882 = vmatmul.mubr.bf16.vlgmr.msra.gmra.mxu0 %v7291_v60  ;;  %v6971_v60 = vld [vmem:[#allocation5 + $0x1028] ss:$12 sps:$4 sm:$0xff]  }
 0x263   :  { %4922 = vmatmul.mubr.bf16.vlgmr.msra.gmra.mxu1 %v7295_v61  ;;  %6057 = vmatpush3.bf16.msra.mxu0 %v6961_v4  ;;  %v6972_v61 = vld [vmem:[#allocation5 + $0x11a8] ss:$12 sps:$4 sm:$0xff]  }
 0x264   :  { %6079 = vmatpush3.bf16.msra.mxu1 %v6962_v5  ;;  %6058 = vmatprep.subr.bf16.mxu0 %v6963_v9  ;;  %v5018_v4 = vld [vmem:[#allocation8 + $0x30] sm:$0xff]  ;;  %v5033_v5 = vld [vmem:[#allocation8 + $0xa8] sm:$0xff] }
 0x265   :  { %6080 = vmatprep.subr.bf16.mxu1 %v6964_v3  ;;  %4961 = vmatprep.mubr.bf16.mxu0 %v7301_v8  ;;  %v6977_v8 = vld [vmem:[#allocation5 + $0xf50] ss:$12 sps:$4 sm:$0xff]   ;;  %v5032_v3 = vld [vmem:[#allocation8 + $0xa0] sm:$0xff] }
 0x266   :  { %5001 = vmatprep.mubr.bf16.mxu1 %v7305_v2  ;;  %v6978_v2 = vld [vmem:[#allocation5 + $0x10d0] ss:$12 sps:$4 sm:$0xff]  }
 0x267   :  { %6059 = vmatpush3.bf16.msra.mxu0 %v6965_v11  ;;  %v5017_v9 = vld [vmem:[#allocation8 + $0x28] sm:$0xff]  ;;  %v5016_v11 = vld [vmem:[#allocation8 + $0x20] sm:$0xff] }
 0x268   :  { %6081 = vmatpush3.bf16.msra.mxu1 %v6966_v16  ;;  %6060 = vmatprep.subr.bf16.mxu0 %v6967_v17  ;;  %v5031_v16 = vld [vmem:[#allocation8 + $0x98] sm:$0xff] }
 0x269   :  { %6082 = vmatprep.subr.bf16.mxu1 %v6968_v59  ;;  %v5015_v59 = vld [vmem:[#allocation8 + $0x18] sm:$0xff] }
 0x26b   :  { %6061 = vmatpush3.bf16.msra.mxu0 %v6969_v12  ;;  %v5030_v12 = vld [vmem:[#allocation8 + $0x90] sm:$0xff] }
 0x26c   :  { %6083 = vmatpush3.bf16.msra.mxu1 %v6970_v62  ;;  %6062 = vmatprep.subr.bf16.mxu0 %v6971_v60  ;;  %v5014_v62 = vld [vmem:[#allocation8 + $0x10] sm:$0xff]  ;;  %v5029_v60 = vld [vmem:[#allocation8 + $0x88] sm:$0xff] }
 0x26d   :  { %6084 = vmatprep.subr.bf16.mxu1 %v6972_v61 }
 0x26f   :  { %6063 = vmatpush3.bf16.msra.mxu0 %v6973_v13  ;;  %v5013_v13 = vld [vmem:[#allocation8 + $0x8] sm:$0xff] }
 0x270   :  { %6085 = vmatpush3.bf16.msra.mxu1 %v6974_v14  ;;  %6064 = vmatprep.subr.bf16.mxu0 %v6975_v15  ;;  %v5028_v14 = vld [vmem:[#allocation8 + $0x80] sm:$0xff] }
 0x271   :  { %6086 = vmatprep.subr.bf16.mxu1 %v6976_v29  ;;  %v5012_v15 = vld [vmem:[#allocation8] sm:$0xff]  ;;  %v876_v29 = vsub.s32 2, %v7255_v54  ;;  %v7133_v54 = vmov 0.0  }
 0x273   :  { %6065 = vmatpush3.bf16.msra.mxu0 %v6977_v8 }
 0x274   :  { %6087 = vmatpush3.bf16.msra.mxu1 %v6978_v2  ;;  %6066 = vmatprep.subr.bf16.mxu0 %v6979_v24  ;;  %v6995_v24 = vld [vmem:[#allocation7] sm:$0x7] }
 0x275   :  { %6088 = vmatprep.subr.bf16.mxu1 %v6980_v25  ;;  %v877_v25 = vrot.slane %v6995_v24, %v876_v29 }
 0x277   :  { %6067 = vmatpush3.bf16.msra.mxu0 %v6981_v20 }
 0x278   :  { %6089 = vmatpush3.bf16.msra.mxu1 %v6982_v6  ;;  %6068 = vmatprep.subr.bf16.mxu0 %v6983_v7 }
 0x279   :  { %6090 = vmatprep.subr.bf16.mxu1 %v6984_v21 }
 0x27b   :  { %6069 = vmatpush3.bf16.msra.mxu0 %v6985_v27 }
 0x27c   :  { %6091 = vmatpush3.bf16.msra.mxu1 %v6986_v26  ;;  %6070 = vmatprep.subr.bf16.mxu0 %v6987_v18 }
 0x27d   :  { %6092 = vmatprep.subr.bf16.mxu1 %v6988_v37 }
 0x27f   :  { %6071 = vmatpush3.bf16.msra.mxu0 %v6989_v31 }
 0x280   :  { %6093 = vmatpush3.bf16.msra.mxu1 %v6990_v0  ;;  %6100 = vmatprep.subr.mxu0 %v5043_v1  ;;  %v5059_v1 = vld [vmem:[#allocation8 + $0x178] sm:$0xff] }
 0x281   :  { %6152 = vmatprep.subr.mxu1 %v7133_v54 }
 0x282   :  { %v4481_v28 = vpop.f32.mrf.mxu0  ;;  %4962 = vmatmul.mubr.bf16.vlgmr.msra.gmra.mxu0 %v7319_v58  ;;  %v5039_v58 = vld [vmem:[#allocation8 + $0xd8] sm:$0xff] }
 0x283   :  { %v7370_v47 = vpop.f32.mrf.mxu1  ;;  %5002 = vmatmul.mubr.bf16.vlgmr.msra.gmra.mxu1 %v7323_v63  ;;  %6101 = vmatpush3.msra.mxu0 %v5027_v34  ;;  %v4482_v17 = vadd.f32 %v4481_v28, %v7360_v33  ;;  %v5057_v34 = vld [vmem:[#allocation8 + $0x168] sm:$0xff]  ;;  %v5055_v28 = vld [vmem:[#allocation8 + $0x158] sm:$0xff] }
 0x284   :  { %v4483_v35 = vpop.f32.mrf.mxu0  ;;  %6102 = vmatprep.subr.mxu0 %v5042_v32  ;;  %6153 = vmatpush3.msra.mxu1 %v5059_v1  ;;  %v5056_v32 = vld [vmem:[#allocation8 + $0x160] sm:$0xff] }
 0x285   :  { %v4524_v40 = vpop.f32.mrf.mxu1  ;;  %v4484_v30 = vadd.f32 %v4483_v35, %v4443_v41  ;;  %6103 = vmatpush3.msra.mxu0 %v5026_v51  ;;  %v4523_v61 = vadd.f32 %v7370_v47, %v4482_v17  ;;  %6154 = vmatprep.subr.mxu1 %v7133_v54  ;;  %v5054_v47 = vld [vmem:[#allocation8 + $0x150] sm:$0xff]  ;;  %v5053_v51 = vld [vmem:[#allocation8 + $0x148] sm:$0xff]  ;;  %v5052_v41 = vld [vmem:[#allocation8 + $0x140] sm:$0xff] }
 0x286   :  { %v4485_v23 = vpop.f32.mrf.mxu0  ;;  %6104 = vmatprep.subr.mxu0 %v5041_v42  ;;  %6155 = vmatpush3.msra.mxu1 %v5058_v10  ;;  %v5051_v42 = vld [vmem:[#allocation8 + $0x138] sm:$0xff]  ;;  %v5050_v35 = vld [vmem:[#allocation8 + $0x130] sm:$0xff] }
 0x287   :  { %v4526_v45 = vpop.f32.mrf.mxu1  ;;  %v4525_v48 = vadd.f32 %v4524_v40, %v4484_v30  ;;  %6105 = vmatpush3.msra.mxu0 %v5025_v19  ;;  %v5009_v33 = vmax.f32 %v4523_v61, 0.0  ;;  %6156 = vmatprep.subr.mxu1 %v7133_v54  ;;  %v5049_v40 = vld [vmem:[#allocation8 + $0x128] sm:$0xff] }
 0x288   :  { %v4486_v63 = vpop.f32.mrf.mxu0  ;;  %6106 = vmatprep.subr.mxu0 %v5040_v43  ;;  %6157 = vmatpush3.msra.mxu1 %v5057_v34  ;;  %v5048_v43 = vld [vmem:[#allocation8 + $0x120] sm:$0xff] }
 0x289   :  { %v4527_v49 = vpop.f32.mrf.mxu1  ;;  %v5010_v50 = vmax.f32 %v4525_v48, 0.0  ;;  %6107 = vmatpush3.msra.mxu0 %v5024_v46  ;;  %6158 = vmatprep.subr.mxu1 %v7133_v54 }
 0x28a   :  { %6108 = vmatprep.subr.mxu0 %v5039_v58  ;;  %6159 = vmatpush3.msra.mxu1 %v5056_v32  ;;  %v5047_v58 = vld [vmem:[#allocation8 + $0x118] sm:$0xff] }
 0x28b   :  { %6109 = vmatpush3.msra.mxu0 %v5023_v36  ;;  %5131 = vmatprep.mubr.f32.mxu0 %v5010_v50  ;;  %v5046_v50 = vld [vmem:[#allocation8 + $0x110] sm:$0xff] }
 0x28c   :  { %6110 = vmatprep.subr.mxu0 %v5038_v52  ;;  %6160 = vmatprep.subr.mxu1 %v7133_v54 }
 0x28d   :  { %6111 = vmatpush3.msra.mxu0 %v5022_v38  ;;  %6161 = vmatpush3.msra.mxu1 %v5055_v28 }
 0x28e   :  { %6112 = vmatprep.subr.mxu0 %v5037_v39  ;;  %6162 = vmatprep.subr.mxu1 %v7133_v54 }
 0x28f   :  { %6113 = vmatpush3.msra.mxu0 %v5021_v53  ;;  %6163 = vmatpush3.msra.mxu1 %v5054_v47  ;;  %v5045_v53 = vld [vmem:[#allocation8 + $0x108] sm:$0xff] }
 0x290   :  { %6114 = vmatprep.subr.mxu0 %v5036_v55  ;;  %6164 = vmatprep.subr.mxu1 %v7133_v54  ;;  %v5044_v55 = vld [vmem:[#allocation8 + $0x100] sm:$0xff] }
 0x291   :  { %6115 = vmatpush3.msra.mxu0 %v5020_v56  ;;  %6165 = vmatpush3.msra.mxu1 %v5053_v51 }
 0x292   :  { %6116 = vmatprep.subr.mxu0 %v5035_v57  ;;  %6166 = vmatprep.subr.mxu1 %v7133_v54 }
 0x293   :  { %6117 = vmatpush3.msra.mxu0 %v5019_v44  ;;  %6167 = vmatpush3.msra.mxu1 %v5052_v41 }
 0x294   :  { %6118 = vmatprep.subr.mxu0 %v5034_v22  ;;  %6168 = vmatprep.subr.mxu1 %v7133_v54 }
 0x295   :  { %6119 = vmatpush3.msra.mxu0 %v5018_v4  ;;  %6169 = vmatpush3.msra.mxu1 %v5051_v42 }
 0x296   :  { %6120 = vmatprep.subr.mxu0 %v5033_v5  ;;  %6170 = vmatprep.subr.mxu1 %v7133_v54 }
 0x297   :  { %6121 = vmatpush3.msra.mxu0 %v5017_v9  ;;  %6171 = vmatpush3.msra.mxu1 %v5050_v35 }
 0x298   :  { %6122 = vmatprep.subr.mxu0 %v5032_v3  ;;  %6172 = vmatprep.subr.mxu1 %v7133_v54 }
 0x299   :  { %6123 = vmatpush3.msra.mxu0 %v5016_v11  ;;  %6173 = vmatpush3.msra.mxu1 %v5049_v40 }
 0x29a   :  { %6124 = vmatprep.subr.mxu0 %v5031_v16  ;;  %6174 = vmatprep.subr.mxu1 %v7133_v54 }
 0x29b   :  { %6125 = vmatpush3.msra.mxu0 %v5015_v59  ;;  %6175 = vmatpush3.msra.mxu1 %v5048_v43 }
 0x29c   :  { %6126 = vmatprep.subr.mxu0 %v5030_v12  ;;  %6176 = vmatprep.subr.mxu1 %v7133_v54 }
 0x29d   :  { %6127 = vmatpush3.msra.mxu0 %v5014_v62  ;;  %6177 = vmatpush3.msra.mxu1 %v5047_v58 }
 0x29e   :  { %6128 = vmatprep.subr.mxu0 %v5029_v60  ;;  %6178 = vmatprep.subr.mxu1 %v7133_v54 }
 0x29f   :  { %6129 = vmatpush3.msra.mxu0 %v5013_v13  ;;  %6179 = vmatpush3.msra.mxu1 %v5046_v50 }
 0x2a0   :  { %6130 = vmatprep.subr.mxu0 %v5028_v14  ;;  %6180 = vmatprep.subr.mxu1 %v7133_v54 }
 0x2a1   :  { %6131 = vmatpush3.msra.mxu0 %v5012_v15  ;;  %6181 = vmatpush3.msra.mxu1 %v5045_v53 }
 0x2a2   :  { %v5852_v8 = vpop.f32.mrf.mxu0  ;;  %5132 = vmatmul.mubr.f32.vlgmr.msra.gmra.mxu0 %v5009_v33  ;;  %6182 = vmatprep.subr.mxu1 %v7133_v54 }
 0x2a3   :  { %v5874_v2 = vpop.f32.mrf.mxu1  ;;  %6183 = vmatpush3.msra.mxu1 %v5044_v55  ;;  %6184 = vmatprep.mubr.msk.f32.mxu1 %vm7134_vm0, %v7133_v54 }
 0x2a4   :  { %v5853_v20 = vpop.f32.mrf.mxu0 }
 0x2a5   :  { %v5875_v6 = vpop.f32.mrf.mxu1  ;;  %v5854_v7 = vadd.f32 %v5853_v20, %v5852_v8 }
 0x2a6   :  { %v5876_v21 = vadd.f32 %v5875_v6, %v5874_v2  ;;  %v5855_v27 = vpop.f32.mrf.mxu0 }
 0x2a7   :  { %v5877_v26 = vpop.f32.mrf.mxu1  ;;  %v4564_v18 = vadd.f32 %v5854_v7, %v877_v25 }
 0x2a8   :  { %v5856_v37 = vpop.f32.mrf.mxu0 }
 0x2a9   :  { %v5878_v31 = vpop.f32.mrf.mxu1  ;;  %v4604_v0 = vadd.f32 %v5876_v21, %v4564_v18 }
 0x2c2   :  { %v5896_v19 = vpop.f32.mrf.mxu0 }
 0x2c3   :  { %v5918_v30 = vpop.f32.mrf.mxu1 }
 0x2c4   :  { %v5897_v23 = vpop.f32.mrf.mxu0 }
 0x2c5   :  { %v5919_v45 = vpop.f32.mrf.mxu1  ;;  %v5898_v46 = vadd.f32 %v5897_v23, %v5896_v19 }
 0x2c6   :  { %v5920_v48 = vadd.f32 %v5919_v45, %v5918_v30  ;;  %v5899_v63 = vpop.f32.mrf.mxu0 }
 0x2c7   :  { %v5921_v49 = vpop.f32.mrf.mxu1  ;;  %v4644_v36 = vadd.f32 %v5898_v46, %v4604_v0  ;;  %v5835_v46 = vld [vmem:[#allocation10] ss:$0 sm:$0xff] }
 0x2c8   :  { %v5900_v52 = vpop.f32.mrf.mxu0 }
 0x2c9   :  { %v5922_v38 = vpop.f32.mrf.mxu1  ;;  %v4684_v39 = vadd.f32 %v5920_v48, %v4644_v36 }
 0x2e2   :  { %v5940_v56 = vpop.f32.mrf.mxu0 }
 0x2e3   :  { %v5962_v57 = vpop.f32.mrf.mxu1 }
 0x2e4   :  { %v5941_v44 = vpop.f32.mrf.mxu0 }
 0x2e5   :  { %v5963_v22 = vpop.f32.mrf.mxu1  ;;  %v5942_v4 = vadd.f32 %v5941_v44, %v5940_v56 }
 0x2e6   :  { %v5964_v5 = vadd.f32 %v5963_v22, %v5962_v57  ;;  %v5943_v9 = vpop.f32.mrf.mxu0 }
 0x2e7   :  { %v5965_v3 = vpop.f32.mrf.mxu1  ;;  %v4724_v11 = vadd.f32 %v5942_v4, %v4684_v39 }
 0x2e8   :  { %v5944_v16 = vpop.f32.mrf.mxu0 }
 0x2e9   :  { %v5966_v17 = vpop.f32.mrf.mxu1  ;;  %v4764_v59 = vadd.f32 %v5964_v5, %v4724_v11 }
 0x302   :  { %v5984_v12 = vpop.f32.mrf.mxu0 }
 0x303   :  { %v6006_v62 = vpop.f32.mrf.mxu1 }
 0x304   :  { %v5985_v60 = vpop.f32.mrf.mxu0 }
 0x305   :  { %v6007_v61 = vpop.f32.mrf.mxu1  ;;  %v5986_v21 = vadd.f32 %v5985_v60, %v5984_v12 }
 0x306   :  { %v5987_v13 = vpop.f32.mrf.mxu0  ;;  %v6008_v26 = vadd.f32 %v6007_v61, %v6006_v62 }
 0x307   :  { %v6009_v14 = vpop.f32.mrf.mxu1  ;;  %v4804_v27 = vadd.f32 %v5986_v21, %v4764_v59 }
 0x308   :  { %v5988_v15 = vpop.f32.mrf.mxu0 }
 0x309   :  { %v6010_v29 = vpop.f32.mrf.mxu1  ;;  %v4844_v37 = vadd.f32 %v6008_v26, %v4804_v27 }
 0x322   :  { %v6028_v33 = vpop.f32.mrf.mxu0 }
 0x323   :  { %v6050_v8 = vpop.f32.mrf.mxu1 }
 0x324   :  { %v6029_v2 = vpop.f32.mrf.mxu0 }
 0x325   :  { %v6051_v24 = vpop.f32.mrf.mxu1  ;;  %v6030_v18 = vadd.f32 %v6029_v2, %v6028_v33 }
 0x326   :  { %v6031_v25 = vpop.f32.mrf.mxu0  ;;  %v6052_v0 = vadd.f32 %v6051_v24, %v6050_v8 }
 0x327   :  { %v6053_v20 = vpop.f32.mrf.mxu1  ;;  %v4884_v31 = vadd.f32 %v6030_v18, %v4844_v37 }
 0x328   :  { %v6032_v6 = vpop.f32.mrf.mxu0 }
 0x329   :  { %v6054_v7 = vpop.f32.mrf.mxu1  ;;  %v4924_v32 = vadd.f32 %v6052_v0, %v4884_v31 }
 0x342   :  { %v6072_v1 = vpop.f32.mrf.mxu0 }
 0x343   :  { %v6094_v54 = vpop.f32.mrf.mxu1 }
 0x344   :  { %v6073_v10 = vpop.f32.mrf.mxu0 }
 0x345   :  { %v6095_v34 = vpop.f32.mrf.mxu1  ;;  %v6074_v28 = vadd.f32 %v6073_v10, %v6072_v1 }
 0x346   :  { %v6075_v47 = vpop.f32.mrf.mxu0  ;;  %v6096_v42 = vadd.f32 %v6095_v34, %v6094_v54 }
 0x347   :  { %v6097_v51 = vpop.f32.mrf.mxu1  ;;  %v4964_v41 = vadd.f32 %v6074_v28, %v4924_v32 }
 0x348   :  { %v6076_v35 = vpop.f32.mrf.mxu0 }
 0x349   :  { %v6098_v40 = vpop.f32.mrf.mxu1  ;;  %v5004_v19 = vadd.f32 %v6096_v42, %v4964_v41 }
 0x34b   :  { %v5011_v30 = vmax.f32 %v5004_v19, 0.0 }
 0x34d   :  { %6185 = vmatmul.mubr.f32.vlgmr.msra.gmra.mxu1 %v5011_v30 }
 0x362   :  { %v6132_v43 = vpop.f32.mrf.mxu0 }
 0x364   :  { %v6133_v23 = vpop.f32.mrf.mxu0 }
 0x365   :  { %v6134_v45 = vadd.f32 %v6133_v23, %v6132_v43 }
 0x367   :  { %v5134_v48 = vadd.f32 %v6134_v45, %v5835_v46 }
 0x40d   :  { %v5203_v58 = vpop.f32.mrf.mxu1 }
 0x40e   :  { %v5204_v63 = vadd.f32 %v5203_v58, %v5134_v48 }
 0x40f   :  { %v6186_v49 = vpop.f32.mrf.mxu1 }
 0x410   :  { %5207 = vmax.xlane.f32.xlu0 %v5204_v63 }
 0x499   :  { %v5208_v36 = vpop.xlane.xlu0 %5207 }
 0x49a   :  { %v5209_v50 = vsub.f32 %v5204_v63, %v5208_v36 }
 0x49c   :  { %v5210_v52 = vmul.f32 1.442695, %v5209_v50 }
 0x49e   :  { %6991 = vpow2.f32 %v5210_v52 }
 0x4ab   :  { %v6992_v38 = vpop.eup %6991 }
 0x4ac   :  { %5212 = vadd.xlane.f32.xlu0 %v6992_v38 }
 0x535   :  { %v5213_v39 = vpop.xlane.xlu0 %5212 }
 0x536   :  { %6993 = vlog2.f32 %v5213_v39 }
 0x543   :  { %v6994_v53 = vpop.eup %6993 }
 0x544   :  { %v5215_v55 = vmul.f32 0.6931472, %v6994_v53 }
 0x546   :  { %v5216_v56 = vsub.f32 %v5209_v50, %v5215_v55 }
 0x548   :  { %5217 = vst [vmem:[#allocation11] sm:$0xff] %v5216_v56 }
 0x549   :  { %7107 = shalt.err (!%p7104_p1)
}
 0x54a   :  { %5227 = dma.vmem_to_hbm [thread:$0]  %s5225_s4, 128, %s7386_s5, [#allocation4]  }
 0x54b   :  { %7122 = dma.done.wait [#allocation4], 128  }
 0x54c   :  { %7123 = vsyncadd [#allocation4], 4294967168 }
 0x54d   :  { %5231 = vsyncpa [#allocation3], 1 }
 0x54e   :  { %5232 = vsyncpa [#allocation6], 1 }
 0x54f   :  { %5233 = vsyncpa [#allocation9], 1 }
 0x550   :  { %5234 = vsyncpa [#allocation4], 1 }

</bundles_post_ra>
